<compile_context>
chip_gen: v7x
topology: tpu7x:2x2x1
jax: 0.10.0
libtpu: 0.0.40
codegen_flags: <defaults>
</compile_context>

<pallas_src>
import functools

import jax
import jax.numpy as jnp
from jax.experimental import pallas as pl
from jax.experimental.pallas import tpu as pltpu

VMEM = pltpu.MemorySpace.VMEM


def _vspec():
    # whole-array block resident in VMEM (all tensors here are tiny)
    return pl.BlockSpec(memory_space=VMEM)


# ----------------------------- Pallas kernels -----------------------------

def picture_net_kernel(img_ref, pool_ref, wc_ref, bc_ref, w1_ref, b1_ref,
                       w2_ref, b2_ref, emb_ref):
    # img:  (N*H*W, C) pixels (channels-last, flattened)
    # pool: (N, N*H*W) block-average matrix -> global average pool as a matmul
    x = img_ref[...].astype(jnp.bfloat16)
    feats = jnp.dot(x, wc_ref[...].astype(jnp.bfloat16),
                    preferred_element_type=jnp.float32) + bc_ref[...]
    feats = jnp.maximum(feats, 0.0)                        # pointwise conv + ReLU
    pooled = jnp.dot(pool_ref[...].astype(jnp.bfloat16),
                     feats.astype(jnp.bfloat16),
                     preferred_element_type=jnp.float32)   # (N, feature_num)
    h = jnp.maximum(jnp.dot(pooled, w1_ref[...],
                            preferred_element_type=jnp.float32) + b1_ref[...],
                    0.0)
    # TODO(synk): nn.Dropout in PictureNet.fcs is identity at inference.
    emb_ref[...] = jnp.dot(h, w2_ref[...],
                           preferred_element_type=jnp.float32) + b2_ref[...]


def video_head_kernel(emb_ref, len_ref, extra_ref, *rest, hidden, seq_len,
                      num_layers):
    # emb: (T, B, input_length) time-major padded frame embeddings
    # len: (B, 1) int32 true sequence lengths
    n_lstm = 3 * num_layers
    lstm_refs = rest[:n_lstm]
    (w_fc1_ref, b_fc1_ref, w_out_ref, b_out_ref,
     probs_ref, logits_ref) = rest[n_lstm:]

    emb = emb_ref[...]
    lengths = len_ref[...]                        # (B, 1) int32
    batch = emb.shape[1]

    layer_in = [emb[t] for t in range(seq_len)]   # list of (B, in_dim)
    hn_list = []
    for l in range(num_layers):
        w_ih = lstm_refs[3 * l][...]              # (in_dim, 4H)
        w_hh = lstm_refs[3 * l + 1][...]          # (H, 4H)
        b = lstm_refs[3 * l + 2][...]             # (1, 4H) = b_ih + b_hh
        h = jnp.zeros((batch, hidden), jnp.float32)
        c = jnp.zeros((batch, hidden), jnp.float32)
        outs = []
        for t in range(seq_len):                  # short static loop, unrolled
            gates = (jnp.dot(layer_in[t], w_ih, preferred_element_type=jnp.float32)
                     + jnp.dot(h, w_hh, preferred_element_type=jnp.float32) + b)
            i = jax.nn.sigmoid(gates[:, 0 * hidden:1 * hidden])
            f = jax.nn.sigmoid(gates[:, 1 * hidden:2 * hidden])
            g = jnp.tanh(gates[:, 2 * hidden:3 * hidden])
            o = jax.nn.sigmoid(gates[:, 3 * hidden:4 * hidden])
            c_new = f * c + i * g
            h_new = o * jnp.tanh(c_new)
            valid = t < lengths                   # packed-sequence semantics:
            h = jnp.where(valid, h_new, h)        # freeze state past seq end
            c = jnp.where(valid, c_new, c)
            outs.append(h)
        hn_list.append(h)                         # final hidden of this layer
        layer_in = outs
        # TODO(synk): inter-layer LSTM dropout is identity at inference.

    # FC head: Linear -> ReLU -> Dropout(identity) -> Linear; the
    # concat([hn_0, ..., hn_{L-1}, extra]) is expressed as partial matmuls.
    w_fc1 = w_fc1_ref[...]
    acc = b_fc1_ref[...]
    off = 0
    for hn in hn_list:
        acc = acc + jnp.dot(hn, w_fc1[off:off + hidden, :],
                            preferred_element_type=jnp.float32)
        off += hidden
    acc = acc + jnp.dot(extra_ref[...], w_fc1[off:, :],
                        preferred_element_type=jnp.float32)
    hmid = jnp.maximum(acc, 0.0)
    logits = jnp.dot(hmid, w_out_ref[...],
                     preferred_element_type=jnp.float32) + b_out_ref[...]
    m = jnp.max(logits, axis=-1, keepdims=True)
    e = jnp.exp(logits - m)
    probs_ref[...] = e * pl.reciprocal(jnp.sum(e, axis=-1, keepdims=True),
                                       approx=True)
    logits_ref[...] = logits


# ------------------------------ pallas wrappers -----------------------------

def pallas_picture_net(img_flat, pool_mat, p):
    n_frames = pool_mat.shape[0]
    d_out = p["w_p2"].shape[1]
    args = (img_flat, pool_mat, p["w_conv"], p["b_conv"],
            p["w_p1"], p["b_p1"], p["w_p2"], p["b_p2"])
    return pl.pallas_call(
        picture_net_kernel,
        out_shape=jax.ShapeDtypeStruct((n_frames, d_out), jnp.float32),
        in_specs=[_vspec()] * len(args),
        out_specs=_vspec(),
    )(*args)


def pallas_video_head(emb_tm, lengths, extra, p):
    seq_len, batch, _ = emb_tm.shape
    hidden = p["hidden_length"]
    num_layers = p["layer_number"]
    bins = p["w_out"].shape[1]
    lstm_flat = []
    for layer in p["lstm"]:
        lstm_flat += [layer["w_ih"], layer["w_hh"], layer["b"]]
    args = (emb_tm, lengths, extra, *lstm_flat,
            p["w_fc1"], p["b_fc1"], p["w_out"], p["b_out"])
    kernel = functools.partial(video_head_kernel, hidden=hidden,
                               seq_len=seq_len, num_layers=num_layers)
    return pl.pallas_call(
        kernel,
        out_shape=(jax.ShapeDtypeStruct((batch, bins), jnp.float32),
                   jax.ShapeDtypeStruct((batch, bins), jnp.float32)),
        in_specs=[_vspec()] * len(args),
        out_specs=(_vspec(), _vspec()),
    )(*args)


# ------------------------------- model glue --------------------------------

def videonet_forward(params, video_input, extra_feats, tag=None):
    # video_input: python list of (n_frames_i, C, H, W) arrays (ragged, as in torch).
    lengths_py = [int(v.shape[0]) for v in video_input]
    batch = len(video_input)
    frames = jnp.concatenate(list(video_input), axis=0)          # (N, C, H, W)
    n_frames, chans, hh, ww = frames.shape
    hw = hh * ww
    img_flat = frames.transpose(0, 2, 3, 1).reshape(n_frames * hw, chans)
    pool_mat = jnp.repeat(jnp.eye(n_frames, dtype=jnp.float32), hw, axis=1) / hw

    # one fused kernel for every frame of every video
    emb_flat = pallas_picture_net(img_flat, pool_mat, params)    # (N, input_length)

    # rnn.pad_sequence equivalent (time-major), static offsets -> tiny XLA glue
    t_max = max(lengths_py)
    d = emb_flat.shape[1]
    segs, off = [], 0
    for n in lengths_py:
        seg = emb_flat[off:off + n]
        if n < t_max:
            seg = jnp.concatenate(
                [seg, jnp.zeros((t_max - n, d), jnp.float32)], axis=0)
        segs.append(seg)
        off += n
    emb_tm = jnp.stack(segs, axis=1)                             # (T, B, D)
    lengths = jnp.asarray(lengths_py, dtype=jnp.int32).reshape(batch, 1)

    # one fused kernel: packed multi-layer LSTM + hn flatten + FC head + softmax
    probs, logits = pallas_video_head(emb_tm, lengths, extra_feats, params)

    if tag is not None:
        logp = jax.nn.log_softmax(logits, axis=1)
        loss = -jnp.mean(jnp.take_along_axis(logp, tag[:, None], axis=1))
    else:
        loss = 0.0
    return probs, loss


# ----------------------------- parameter init ------------------------------

def init_params(key, *, in_channels=4, feature_num=32, pic_linear_hidden=16,
                input_length=16, hidden_length=16, layer_number=2,
                linear_hidden_length=16, extra_length=4, bin_number=5):
    def nrm(k, shape, scale=0.1):
        return jax.random.normal(k, shape, dtype=jnp.float32) * scale

    keys = iter(jax.random.split(key, 8 + 3 * layer_number))
    p = {
        "hidden_length": hidden_length,
        "layer_number": layer_number,
        # --- PictureNet stand-in (synthetic EfficientNet replacement) ---
        "w_conv": nrm(next(keys), (in_channels, feature_num)),
        "b_conv": jnp.zeros((1, feature_num), jnp.float32),
        "w_p1": nrm(next(keys), (feature_num, pic_linear_hidden)),
        "b_p1": jnp.zeros((1, pic_linear_hidden), jnp.float32),
        "w_p2": nrm(next(keys), (pic_linear_hidden, input_length)),
        "b_p2": jnp.zeros((1, input_length), jnp.float32),
        "lstm": [],
    }
    for l in range(layer_number):
        in_dim = input_length if l == 0 else hidden_length
        p["lstm"].append({
            "w_ih": nrm(next(keys), (in_dim, 4 * hidden_length)),
            "w_hh": nrm(next(keys), (hidden_length, 4 * hidden_length)),
            "b": jnp.zeros((1, 4 * hidden_length), jnp.float32),  # b_ih + b_hh
        })
    p["w_fc1"] = nrm(next(keys), (hidden_length * layer_number + extra_length,
                                  linear_hidden_length))
    p["b_fc1"] = jnp.zeros((1, linear_hidden_length), jnp.float32)
    p["w_out"] = nrm(next(keys), (linear_hidden_length, bin_number))
    p["b_out"] = jnp.zeros((1, bin_number), jnp.float32)
    return p


# ---------------------------------- main ------------------------------------

if __name__ == "__main__":
    key = jax.random.PRNGKey(0)
    k_param, k_v0, k_v1, k_extra = jax.random.split(key, 4)

    C, HI, WI = 4, 16, 16
    EXTRA = 4
    frame_counts = [5, 3]          # ragged videos, exercises packed-seq masking
    B = len(frame_counts)

    params = init_params(k_param, in_channels=C, extra_length=EXTRA)

    video_input = [
        jax.random.normal(k_v0, (frame_counts[0], C, HI, WI), dtype=jnp.float32),
        jax.random.normal(k_v1, (frame_counts[1], C, HI, WI), dtype=jnp.float32),
    ]
    extra_feats = jax.random.normal(k_extra, (B, EXTRA), dtype=jnp.float32)

    out_probs, loss = videonet_forward(params, video_input, extra_feats, tag=None)
    out_probs = jax.block_until_ready(out_probs)

    assert out_probs.shape == (B, 5)
    assert bool(jnp.all(jnp.isfinite(out_probs)))
    # pl.reciprocal(approx=True) in the softmax gives ~1e-3-level normalization error
    assert bool(jnp.allclose(jnp.sum(out_probs, axis=1), 1.0, atol=5e-3))
    print("KERNEL_OK")
</pallas_src>

<mosaic_0001>
module attributes {stable_mosaic.version = 11 : i64} {
  func.func @picture_net_kernel(%arg0: memref<2048x4xf32, #tpu.memory_space<vmem>>, %arg1: memref<8x2048xf32, #tpu.memory_space<vmem>>, %arg2: memref<4x32xf32, #tpu.memory_space<vmem>>, %arg3: memref<1x32xf32, #tpu.memory_space<vmem>>, %arg4: memref<32x16xf32, #tpu.memory_space<vmem>>, %arg5: memref<1x16xf32, #tpu.memory_space<vmem>>, %arg6: memref<16x16xf32, #tpu.memory_space<vmem>>, %arg7: memref<1x16xf32, #tpu.memory_space<vmem>>, %arg8: memref<8x16xf32, #tpu.memory_space<vmem>>) attributes {dimension_semantics = [], scalar_prefetch = 0 : i64, scratch_operands = 0 : i64, tpu.core_type = #tpu.core_type<tc>} {
    %c0 = arith.constant 0 : index
    %c0_0 = arith.constant 0 : index
    %0 = vector.load %arg0[%c0, %c0_0] : memref<2048x4xf32, #tpu.memory_space<vmem>>, vector<2048x4xf32>
    %1 = arith.truncf %0 : vector<2048x4xf32> to vector<2048x4xbf16>
    %c0_1 = arith.constant 0 : index
    %c0_2 = arith.constant 0 : index
    %2 = vector.load %arg2[%c0_1, %c0_2] : memref<4x32xf32, #tpu.memory_space<vmem>>, vector<4x32xf32>
    %3 = arith.truncf %2 : vector<4x32xf32> to vector<4x32xbf16>
    %cst = arith.constant dense<0.000000e+00> : vector<2048x32xf32>
    %4 = tpu.matmul %1, %3, %cst {dimension_numbers = #tpu.dot_dimension_numbers<[1], [0], [0], [1], [0, 0, 1, 1], [], []>} : vector<2048x4xbf16>, vector<4x32xbf16>, vector<2048x32xf32> -> vector<2048x32xf32>
    %c0_3 = arith.constant 0 : index
    %c0_4 = arith.constant 0 : index
    %5 = vector.load %arg3[%c0_3, %c0_4] : memref<1x32xf32, #tpu.memory_space<vmem>>, vector<1x32xf32>
    %6 = vector.broadcast %5 : vector<1x32xf32> to vector<2048x32xf32>
    %7 = arith.addf %4, %6 : vector<2048x32xf32>
    %cst_5 = arith.constant 0.000000e+00 : f32
    %8 = vector.broadcast %cst_5 : f32 to vector<2048x32xf32>
    %9 = arith.maximumf %7, %8 : vector<2048x32xf32>
    %c0_6 = arith.constant 0 : index
    %c0_7 = arith.constant 0 : index
    %10 = vector.load %arg1[%c0_6, %c0_7] : memref<8x2048xf32, #tpu.memory_space<vmem>>, vector<8x2048xf32>
    %11 = arith.truncf %10 : vector<8x2048xf32> to vector<8x2048xbf16>
    %12 = arith.truncf %9 : vector<2048x32xf32> to vector<2048x32xbf16>
    %cst_8 = arith.constant dense<0.000000e+00> : vector<8x32xf32>
    %13 = tpu.matmul %11, %12, %cst_8 {dimension_numbers = #tpu.dot_dimension_numbers<[1], [0], [0], [1], [0, 0, 1, 1], [], []>} : vector<8x2048xbf16>, vector<2048x32xbf16>, vector<8x32xf32> -> vector<8x32xf32>
    %c0_9 = arith.constant 0 : index
    %c0_10 = arith.constant 0 : index
    %14 = vector.load %arg4[%c0_9, %c0_10] : memref<32x16xf32, #tpu.memory_space<vmem>>, vector<32x16xf32>
    %cst_11 = arith.constant dense<0.000000e+00> : vector<8x16xf32>
    %15 = tpu.matmul %13, %14, %cst_11 {dimension_numbers = #tpu.dot_dimension_numbers<[1], [0], [0], [1], [0, 0, 1, 1], [], []>} : vector<8x32xf32>, vector<32x16xf32>, vector<8x16xf32> -> vector<8x16xf32>
    %c0_12 = arith.constant 0 : index
    %c0_13 = arith.constant 0 : index
    %16 = vector.load %arg5[%c0_12, %c0_13] : memref<1x16xf32, #tpu.memory_space<vmem>>, vector<1x16xf32>
    %17 = vector.broadcast %16 : vector<1x16xf32> to vector<8x16xf32>
    %18 = arith.addf %15, %17 : vector<8x16xf32>
    %cst_14 = arith.constant 0.000000e+00 : f32
    %19 = vector.broadcast %cst_14 : f32 to vector<8x16xf32>
    %20 = arith.maximumf %18, %19 : vector<8x16xf32>
    %c0_15 = arith.constant 0 : index
    %c0_16 = arith.constant 0 : index
    %21 = vector.load %arg6[%c0_15, %c0_16] : memref<16x16xf32, #tpu.memory_space<vmem>>, vector<16x16xf32>
    %cst_17 = arith.constant dense<0.000000e+00> : vector<8x16xf32>
    %22 = tpu.matmul %20, %21, %cst_17 {dimension_numbers = #tpu.dot_dimension_numbers<[1], [0], [0], [1], [0, 0, 1, 1], [], []>} : vector<8x16xf32>, vector<16x16xf32>, vector<8x16xf32> -> vector<8x16xf32>
    %c0_18 = arith.constant 0 : index
    %c0_19 = arith.constant 0 : index
    %23 = vector.load %arg7[%c0_18, %c0_19] : memref<1x16xf32, #tpu.memory_space<vmem>>, vector<1x16xf32>
    %24 = vector.broadcast %23 : vector<1x16xf32> to vector<8x16xf32>
    %25 = arith.addf %22, %24 : vector<8x16xf32>
    %c0_20 = arith.constant 0 : index
    %c0_21 = arith.constant 0 : index
    %26 = vector.load %arg8[%c0_20, %c0_21] : memref<8x16xf32, #tpu.memory_space<vmem>>, vector<8x16xf32>
    tpu.vector_store %arg8[%c0_20, %c0_21], %25 {strides = array<i32>} : memref<8x16xf32, #tpu.memory_space<vmem>>, vector<8x16xf32>,
    return
  }
}

</mosaic_0001>

<bundles_post_ra>
// kernel: tpu_custom_call.1
= control target key start
LH: loop header
LB: loop body
LE: loop exit
PB: predicated region body
PF: predicated region fallthrough
CT: control target
= control target key end

     0   :  { %vm809_vm0 = vcmask 1041408   ;;  %vm424_vm1 = vcmask 31744   ;;  %s5112_s0 = inlined_call_operand.vmem [shape: f32[2048,4], index: 0, kind: input, shape index: {}]   ;;  %s5113_s1 = inlined_call_operand.vmem [shape: f32[8,2048], index: 1, kind: input, shape index: {}]   ;;  %s5114_s2 = inlined_call_operand.vmem [shape: f32[4,32], index: 2, kind: input, shape index: {}]   ;;  %s5115_s3 = inlined_call_operand.vmem [shape: f32[1,32], index: 3, kind: input, shape index: {}]   ;;  %s5116_s4 = inlined_call_operand.vmem [shape: f32[32,16], index: 4, kind: input, shape index: {}]   ;;  %s5117_s5 = inlined_call_operand.vmem [shape: f32[1,16], index: 5, kind: input, shape index: {}]   ;;  %s5118_s6 = inlined_call_operand.vmem [shape: f32[16,16], index: 6, kind: input, shape index: {}]   ;;  %s5119_s7 = inlined_call_operand.vmem [shape: f32[1,16], index: 7, kind: input, shape index: {}]   ;;  %s5120_s8 = inlined_call_operand.hbm [shape: f32[8,16], index: 8, kind: output, shape index: {}]  }
   0x1   :  { %v415_v0 = vld [vmem:[%s5114_s2] sm:$0xf]  ;;  %v32_v2 = vld [vmem:[%s5112_s0 + $0x8] sm:$0xff]  ;;  %v33_v5 = vld [vmem:[%s5112_s0 + $0x10] sm:$0xff] }
   0x2   :  { %v31_v1 = vld [vmem:[%s5112_s0] sm:$0xff]  ;;  %v416_v3 = vpack.c.bf16 %v415_v0, %v415_v0  ;;  %v34_v6 = vld [vmem:[%s5112_s0 + $0x18] sm:$0xff]  ;;  %v36_v8 = vld [vmem:[%s5112_s0 + $0x28] sm:$0xff] }
   0x3   :  { %v287_v4 = vpack.c.bf16 %v32_v2, %v31_v1  ;;  %v35_v7 = vld [vmem:[%s5112_s0 + $0x20] sm:$0xff]  ;;  %v288_v10 = vpack.c.bf16 %v34_v6, %v33_v5  ;;  %v37_v12 = vld [vmem:[%s5112_s0 + $0x30] sm:$0xff]  ;;  %v38_v13 = vld [vmem:[%s5112_s0 + $0x38] sm:$0xff] }
   0x4   :  { %3523 = vmatprep.subr.msk.bf16.mxu0 %vm809_vm0, %v416_v3  ;;  %v811_v9 = vsel %vm809_vm0, %v416_v3, 0  ;;  %v289_v11 = vpack.c.bf16 %v36_v8, %v35_v7  ;;  %3524 = vmatprep.subr.msk.bf16.mxu1 %vm809_vm0, %v416_v3  ;;  %v39_v14 = vld [vmem:[%s5112_s0 + $0x40] sm:$0xff]  ;;  %v40_v15 = vld [vmem:[%s5112_s0 + $0x48] sm:$0xff]  ;;  %v290_v16 = vpack.c.bf16 %v38_v13, %v37_v12  ;;  %v41_v18 = vld [vmem:[%s5112_s0 + $0x50] sm:$0xff] }
   0x5   :  { %3238 = vmatprep.mubr.msk.bf16.mxu0 %vm424_vm1, %v287_v4  ;;  %3237 = vmatpush3.bf16.msra.mxu0 %v811_v9  ;;  %v291_v17 = vpack.c.bf16 %v40_v15, %v39_v14  ;;  %v42_v19 = vld [vmem:[%s5112_s0 + $0x58] sm:$0xff]  ;;  %v43_v20 = vld [vmem:[%s5112_s0 + $0x60] sm:$0xff]  ;;  %v44_v21 = vld [vmem:[%s5112_s0 + $0x68] sm:$0xff] }
   0x6   :  { %3522 = vmatpush3.bf16.msra.mxu1 %v811_v9  ;;  %v292_v22 = vpack.c.bf16 %v42_v19, %v41_v18  ;;  %v293_v23 = vpack.c.bf16 %v44_v21, %v43_v20  ;;  %v45_v24 = vld [vmem:[%s5112_s0 + $0x70] sm:$0xff]  ;;  %v46_v25 = vld [vmem:[%s5112_s0 + $0x78] sm:$0xff]  ;;  %v47_v26 = vld [vmem:[%s5112_s0 + $0x80] sm:$0xff] }
   0x7   :  { %v48_v27 = vld [vmem:[%s5112_s0 + $0x88] sm:$0xff]  ;;  %v294_v28 = vpack.c.bf16 %v46_v25, %v45_v24 }
   0x8   :  { %3239 = vmatmul.mubr.msk.bf16.vlgmr.msra.gmra.mrb[0].mxu0 %vm424_vm1, %v288_v10 }
   0x9   :  { %3242 = vmatprep.mubr.msk.bf16.mxu0 %vm424_vm1, %v289_v11 }
  0x10   :  { %3243 = vmatmul.mubr.msk.bf16.gmra.mrb[4].mxu0 %vm424_vm1, %v290_v16 }
  0x11   :  { %3246 = vmatprep.mubr.msk.bf16.mxu0 %vm424_vm1, %v291_v17 }
  0x18   :  { %3247 = vmatmul.mubr.msk.bf16.gmra.mrb[8].mxu0 %vm424_vm1, %v292_v22 }
  0x19   :  { %3250 = vmatprep.mubr.msk.bf16.mxu0 %vm424_vm1, %v293_v23 }
  0x1a   :  { %13 = vsyncpa [#allocation3], 0  ;;  %v295_v29 = vpack.c.bf16 %v48_v27, %v47_v26  ;;  %v49_v30 = vld [vmem:[%s5112_s0 + $0x90] sm:$0xff]  ;;  %v50_v31 = vld [vmem:[%s5112_s0 + $0x98] sm:$0xff]  ;;  %vm3556_vm2 = vmmov 0   ;;  %vm2617_vm3 = vcmask 261120  }
  0x1b   :  { %v51_v32 = vld [vmem:[%s5112_s0 + $0xa0] sm:$0xff]  ;;  %v52_v33 = vld [vmem:[%s5112_s0 + $0xa8] sm:$0xff]  ;;  %v296_v34 = vpack.c.bf16 %v50_v31, %v49_v30  ;;  %v53_v36 = vld [vmem:[%s5112_s0 + $0xb0] sm:$0xff]  ;;  %vm2701_vm4 = vcmask 130048   ;;  %s3558_s2 = smov [#allocation2]  }
  0x1c   :  { %v297_v35 = vpack.c.bf16 %v52_v33, %v51_v32  ;;  %v54_v37 = vld [vmem:[%s5112_s0 + $0xb8] sm:$0xff]  ;;  %v55_v38 = vld [vmem:[%s5112_s0 + $0xc0] sm:$0xff]  ;;  %v56_v39 = vld [vmem:[%s5112_s0 + $0xc8] sm:$0xff]  ;;  %s2782_s15 = sshll.u32 %s3558_s2, 4  ;;  %s2783_s15 = int_to_ptr.vmem [resolvable:$true] %s2782_s15 }
  0x1d   :  { %v298_v40 = vpack.c.bf16 %v54_v37, %v53_v36  ;;  %v299_v41 = vpack.c.bf16 %v56_v39, %v55_v38  ;;  %v57_v42 = vld [vmem:[%s5112_s0 + $0xd0] sm:$0xff]  ;;  %v58_v43 = vld [vmem:[%s5112_s0 + $0xd8] sm:$0xff]  ;;  %v59_v44 = vld [vmem:[%s5112_s0 + $0xe0] sm:$0xff]  ;;  %p3536_p1 = scmp.lt.s32.totalorder %s2783_s15, %s2783_s15 }
  0x1e   :  { %v60_v45 = vld [vmem:[%s5112_s0 + $0xe8] sm:$0xff]  ;;  %v300_v46 = vpack.c.bf16 %v58_v43, %v57_v42  ;;  %v219_v48 = vld [vmem:[%s5112_s0 + $0x5e0] sm:$0xff]  ;;  %v221_v50 = vld [vmem:[%s5112_s0 + $0x5f0] sm:$0xff] }
  0x1f   :  { %v301_v47 = vpack.c.bf16 %v60_v45, %v59_v44  ;;  %v220_v49 = vld [vmem:[%s5112_s0 + $0x5e8] sm:$0xff]  ;;  %v61_v51 = vld [vmem:[%s5112_s0 + $0xf0] sm:$0xff]  ;;  %v62_v52 = vld [vmem:[%s5112_s0 + $0xf8] sm:$0xff] }
  0x20   :  { %3251 = vmatmul.mubr.msk.bf16.gmra.mrb[12].mxu0 %vm424_vm1, %v294_v28  ;;  %v381_v53 = vpack.c.bf16 %v220_v49, %v219_v48  ;;  %v222_v54 = vld [vmem:[%s5112_s0 + $0x5f8] sm:$0xff]  ;;  %v63_v55 = vld [vmem:[%s5112_s0 + $0x100] sm:$0xff]  ;;  %v64_v56 = vld [vmem:[%s5112_s0 + $0x108] sm:$0xff]  ;;  %v302_v58 = vpack.c.bf16 %v62_v52, %v61_v51 }
  0x21   :  { %3254 = vmatprep.mubr.msk.bf16.mxu0 %vm424_vm1, %v295_v29  ;;  %v382_v57 = vpack.c.bf16 %v222_v54, %v221_v50  ;;  %v303_v59 = vpack.c.bf16 %v64_v56, %v63_v55  ;;  %v223_v60 = vld [vmem:[%s5112_s0 + $0x600] sm:$0xff]  ;;  %v224_v61 = vld [vmem:[%s5112_s0 + $0x608] sm:$0xff]  ;;  %v225_v62 = vld [vmem:[%s5112_s0 + $0x610] sm:$0xff] }
  0x22   :  { %3426 = vmatprep.mubr.msk.bf16.mxu1 %vm424_vm1, %v381_v53  ;;  %v65_v63 = vld [vmem:[%s5112_s0 + $0x110] sm:$0xff]  ;;  %v66_v0 = vld [vmem:[%s5112_s0 + $0x118] sm:$0xff]  ;;  %v383_v1 = vpack.c.bf16 %v224_v61, %v223_v60  ;;  %v67_v3 = vld [vmem:[%s5112_s0 + $0x120] sm:$0xff] }
  0x23   :  { %3427 = vmatmul.mubr.msk.bf16.vlgmr.msra.gmra.mrb[0].mxu1 %vm424_vm1, %v382_v57  ;;  %v226_v2 = vld [vmem:[%s5112_s0 + $0x618] sm:$0xff]  ;;  %v68_v4 = vld [vmem:[%s5112_s0 + $0x128] sm:$0xff]  ;;  %v304_v6 = vpack.c.bf16 %v66_v0, %v65_v63  ;;  %v227_v8 = vld [vmem:[%s5112_s0 + $0x620] sm:$0xff] }
  0x24   :  { %v384_v5 = vpack.c.bf16 %v226_v2, %v225_v62  ;;  %3430 = vmatprep.mubr.msk.bf16.mxu1 %vm424_vm1, %v383_v1  ;;  %v305_v7 = vpack.c.bf16 %v68_v4, %v67_v3  ;;  %v228_v9 = vld [vmem:[%s5112_s0 + $0x628] sm:$0xff]  ;;  %v229_v10 = vld [vmem:[%s5112_s0 + $0x630] sm:$0xff]  ;;  %v70_v12 = vld [vmem:[%s5112_s0 + $0x138] sm:$0xff] }
  0x25   :  { %v69_v11 = vld [vmem:[%s5112_s0 + $0x130] sm:$0xff]  ;;  %v385_v13 = vpack.c.bf16 %v228_v9, %v227_v8  ;;  %v230_v14 = vld [vmem:[%s5112_s0 + $0x638] sm:$0xff]  ;;  %v71_v15 = vld [vmem:[%s5112_s0 + $0x140] sm:$0xff] }
  0x26   :  { %v72_v16 = vld [vmem:[%s5112_s0 + $0x148] sm:$0xff]  ;;  %v386_v17 = vpack.c.bf16 %v230_v14, %v229_v10  ;;  %v306_v18 = vpack.c.bf16 %v70_v12, %v69_v11  ;;  %v231_v20 = vld [vmem:[%s5112_s0 + $0x640] sm:$0xff]  ;;  %v233_v22 = vld [vmem:[%s5112_s0 + $0x650] sm:$0xff] }
  0x27   :  { %v307_v19 = vpack.c.bf16 %v72_v16, %v71_v15  ;;  %v232_v21 = vld [vmem:[%s5112_s0 + $0x648] sm:$0xff]  ;;  %v73_v23 = vld [vmem:[%s5112_s0 + $0x150] sm:$0xff]  ;;  %v74_v24 = vld [vmem:[%s5112_s0 + $0x158] sm:$0xff] }
  0x28   :  { %3255 = vmatmul.mubr.msk.bf16.gmra.mrb[16].mxu0 %vm424_vm1, %v296_v34  ;;  %v387_v25 = vpack.c.bf16 %v232_v21, %v231_v20  ;;  %v234_v26 = vld [vmem:[%s5112_s0 + $0x658] sm:$0xff]  ;;  %v75_v27 = vld [vmem:[%s5112_s0 + $0x160] sm:$0xff]  ;;  %v76_v28 = vld [vmem:[%s5112_s0 + $0x168] sm:$0xff]  ;;  %v308_v30 = vpack.c.bf16 %v74_v24, %v73_v23 }
  0x29   :  { %3258 = vmatprep.mubr.msk.bf16.mxu0 %vm424_vm1, %v297_v35  ;;  %v388_v29 = vpack.c.bf16 %v234_v26, %v233_v22  ;;  %v309_v31 = vpack.c.bf16 %v76_v28, %v75_v27  ;;  %v77_v32 = vld [vmem:[%s5112_s0 + $0x170] sm:$0xff]  ;;  %v78_v33 = vld [vmem:[%s5112_s0 + $0x178] sm:$0xff]  ;;  %v79_v34 = vld [vmem:[%s5112_s0 + $0x180] sm:$0xff] }
  0x2a   :  { %v80_v35 = vld [vmem:[%s5112_s0 + $0x188] sm:$0xff]  ;;  %v235_v36 = vld [vmem:[%s5112_s0 + $0x660] sm:$0xff]  ;;  %v237_v39 = vld [vmem:[%s5112_s0 + $0x670] sm:$0xff] }
  0x2b   :  { %3431 = vmatmul.mubr.msk.bf16.gmra.mrb[4].mxu1 %vm424_vm1, %v384_v5  ;;  %v236_v37 = vld [vmem:[%s5112_s0 + $0x668] sm:$0xff]  ;;  %v311_v43 = vpack.c.bf16 %v80_v35, %v79_v34  ;;  %v81_v44 = vld [vmem:[%s5112_s0 + $0x190] sm:$0xff]  ;;  %v82_v45 = vld [vmem:[%s5112_s0 + $0x198] sm:$0xff] }
  0x2c   :  { %3434 = vmatprep.mubr.msk.bf16.mxu1 %vm424_vm1, %v385_v13  ;;  %v389_v38 = vpack.c.bf16 %v236_v37, %v235_v36  ;;  %v239_v48 = vld [vmem:[%s5112_s0 + $0x680] sm:$0xff]  ;;  %v240_v49 = vld [vmem:[%s5112_s0 + $0x688] sm:$0xff]  ;;  %v241_v51 = vld [vmem:[%s5112_s0 + $0x690] sm:$0xff]  ;;  %v312_v53 = vpack.c.bf16 %v82_v45, %v81_v44 }
  0x2d   :  { %v391_v50 = vpack.c.bf16 %v240_v49, %v239_v48  ;;  %v242_v52 = vld [vmem:[%s5112_s0 + $0x698] sm:$0xff]  ;;  %v85_v56 = vld [vmem:[%s5112_s0 + $0x1b0] sm:$0xff]  ;;  %v243_v60 = vld [vmem:[%s5112_s0 + $0x6a0] sm:$0xff] }
  0x2e   :  { %v392_v54 = vpack.c.bf16 %v242_v52, %v241_v51  ;;  %v86_v57 = vld [vmem:[%s5112_s0 + $0x1b8] sm:$0xff]  ;;  %v244_v61 = vld [vmem:[%s5112_s0 + $0x6a8] sm:$0xff]  ;;  %v245_v63 = vld [vmem:[%s5112_s0 + $0x6b0] sm:$0xff] }
  0x2f   :  { %v393_v62 = vpack.c.bf16 %v244_v61, %v243_v60  ;;  %v246_v0 = vld [vmem:[%s5112_s0 + $0x6b8] sm:$0xff]  ;;  %v314_v1 = vpack.c.bf16 %v86_v57, %v85_v56  ;;  %v89_v4 = vld [vmem:[%s5112_s0 + $0x1d0] sm:$0xff]  ;;  %v247_v8 = vld [vmem:[%s5112_s0 + $0x6c0] sm:$0xff] }
  0x30   :  { %3259 = vmatmul.mubr.msk.bf16.gmra.mrb[20].mxu0 %vm424_vm1, %v298_v40  ;;  %v238_v40 = vld [vmem:[%s5112_s0 + $0x678] sm:$0xff]  ;;  %v394_v2 = vpack.c.bf16 %v246_v0, %v245_v63  ;;  %v248_v9 = vld [vmem:[%s5112_s0 + $0x6c8] sm:$0xff]  ;;  %v249_v11 = vld [vmem:[%s5112_s0 + $0x6d0] sm:$0xff] }
  0x31   :  { %3262 = vmatprep.mubr.msk.bf16.mxu0 %vm424_vm1, %v299_v41  ;;  %v310_v41 = vpack.c.bf16 %v78_v33, %v77_v32  ;;  %v390_v42 = vpack.c.bf16 %v238_v40, %v237_v39  ;;  %v90_v5 = vld [vmem:[%s5112_s0 + $0x1d8] sm:$0xff]  ;;  %v395_v10 = vpack.c.bf16 %v248_v9, %v247_v8  ;;  %v93_v16 = vld [vmem:[%s5112_s0 + $0x1f0] sm:$0xff]  ;;  %v251_v20 = vld [vmem:[%s5112_s0 + $0x6e0] sm:$0xff] }
  0x32   :  { %v250_v12 = vld [vmem:[%s5112_s0 + $0x6d8] sm:$0xff]  ;;  %v316_v13 = vpack.c.bf16 %v90_v5, %v89_v4  ;;  %v252_v21 = vld [vmem:[%s5112_s0 + $0x6e8] sm:$0xff]  ;;  %v253_v23 = vld [vmem:[%s5112_s0 + $0x6f0] sm:$0xff] }
  0x33   :  { %3435 = vmatmul.mubr.msk.bf16.gmra.mrb[8].mxu1 %vm424_vm1, %v386_v17  ;;  %v396_v14 = vpack.c.bf16 %v250_v12, %v249_v11  ;;  %v94_v17 = vld [vmem:[%s5112_s0 + $0x1f8] sm:$0xff]  ;;  %v397_v22 = vpack.c.bf16 %v252_v21, %v251_v20  ;;  %v97_v28 = vld [vmem:[%s5112_s0 + $0x210] sm:$0xff]  ;;  %v255_v32 = vld [vmem:[%s5112_s0 + $0x700] sm:$0xff] }
  0x34   :  { %3438 = vmatprep.mubr.msk.bf16.mxu1 %vm424_vm1, %v387_v25  ;;  %v254_v24 = vld [vmem:[%s5112_s0 + $0x6f8] sm:$0xff]  ;;  %v318_v25 = vpack.c.bf16 %v94_v17, %v93_v16  ;;  %v256_v33 = vld [vmem:[%s5112_s0 + $0x708] sm:$0xff]  ;;  %v257_v35 = vld [vmem:[%s5112_s0 + $0x710] sm:$0xff] }
  0x35   :  { %v398_v26 = vpack.c.bf16 %v254_v24, %v253_v23  ;;  %v399_v34 = vpack.c.bf16 %v256_v33, %v255_v32  ;;  %v258_v36 = vld [vmem:[%s5112_s0 + $0x718] sm:$0xff]  ;;  %v101_v40 = vld [vmem:[%s5112_s0 + $0x230] sm:$0xff]  ;;  %v259_v44 = vld [vmem:[%s5112_s0 + $0x720] sm:$0xff] }
  0x36   :  { %v260_v45 = vld [vmem:[%s5112_s0 + $0x728] sm:$0xff]  ;;  %v262_v48 = vld [vmem:[%s5112_s0 + $0x738] sm:$0xff]  ;;  %v105_v52 = vld [vmem:[%s5112_s0 + $0x250] sm:$0xff] }
  0x37   :  { %v263_v56 = vld [vmem:[%s5112_s0 + $0x740] sm:$0xff]  ;;  %v264_v57 = vld [vmem:[%s5112_s0 + $0x748] sm:$0xff]  ;;  %v266_v60 = vld [vmem:[%s5112_s0 + $0x758] sm:$0xff] }
  0x38   :  { %3263 = vmatmul.mubr.msk.bf16.gmra.mrb[24].mxu0 %vm424_vm1, %v300_v46  ;;  %v83_v46 = vld [vmem:[%s5112_s0 + $0x1a0] sm:$0xff]  ;;  %v109_v0 = vld [vmem:[%s5112_s0 + $0x270] sm:$0xff]  ;;  %v268_v5 = vld [vmem:[%s5112_s0 + $0x768] sm:$0xff] }
  0x39   :  { %3266 = vmatprep.mubr.msk.bf16.mxu0 %vm424_vm1, %v301_v47  ;;  %v84_v47 = vld [vmem:[%s5112_s0 + $0x1a8] sm:$0xff]  ;;  %v267_v4 = vld [vmem:[%s5112_s0 + $0x760] sm:$0xff]  ;;  %v270_v8 = vld [vmem:[%s5112_s0 + $0x778] sm:$0xff] }
  0x3a   :  { %v313_v55 = vpack.c.bf16 %v84_v47, %v83_v46  ;;  %v401_v46 = vpack.c.bf16 %v260_v45, %v259_v44  ;;  %v261_v47 = vld [vmem:[%s5112_s0 + $0x730] sm:$0xff]  ;;  %v271_v16 = vld [vmem:[%s5112_s0 + $0x780] sm:$0xff]  ;;  %v272_v17 = vld [vmem:[%s5112_s0 + $0x788] sm:$0xff] }
  0x3b   :  { %3439 = vmatmul.mubr.msk.bf16.gmra.mrb[12].mxu1 %vm424_vm1, %v388_v29  ;;  %v98_v29 = vld [vmem:[%s5112_s0 + $0x218] sm:$0xff]  ;;  %v113_v12 = vld [vmem:[%s5112_s0 + $0x290] sm:$0xff] }
  0x3c   :  { %3442 = vmatprep.mubr.msk.bf16.mxu1 %vm424_vm1, %v389_v38  ;;  %v320_v37 = vpack.c.bf16 %v98_v29, %v97_v28  ;;  %v400_v38 = vpack.c.bf16 %v258_v36, %v257_v35  ;;  %v274_v20 = vld [vmem:[%s5112_s0 + $0x798] sm:$0xff]  ;;  %v117_v24 = vld [vmem:[%s5112_s0 + $0x2b0] sm:$0xff]  ;;  %v275_v28 = vld [vmem:[%s5112_s0 + $0x7a0] sm:$0xff] }
  0x3d   :  { %v276_v29 = vld [vmem:[%s5112_s0 + $0x7a8] sm:$0xff]  ;;  %v278_v32 = vld [vmem:[%s5112_s0 + $0x7b8] sm:$0xff]  ;;  %v121_v36 = vld [vmem:[%s5112_s0 + $0x2d0] sm:$0xff] }
  0x3e   :  { %v282_v44 = vld [vmem:[%s5112_s0 + $0x7d8] sm:$0xff] }
  0x40   :  { %3267 = vmatmul.mubr.msk.bf16.gmra.mrb[28].mxu0 %vm424_vm1, %v302_v58  ;;  %v87_v58 = vld [vmem:[%s5112_s0 + $0x1c0] sm:$0xff] }
  0x41   :  { %3270 = vmatprep.mubr.msk.bf16.mxu0 %vm424_vm1, %v303_v59  ;;  %v88_v59 = vld [vmem:[%s5112_s0 + $0x1c8] sm:$0xff] }
  0x42   :  { %v315_v3 = vpack.c.bf16 %v88_v59, %v87_v58  ;;  %v403_v58 = vpack.c.bf16 %v264_v57, %v263_v56  ;;  %v265_v59 = vld [vmem:[%s5112_s0 + $0x750] sm:$0xff]  ;;  %v286_v56 = vld [vmem:[%s5112_s0 + $0x7f8] sm:$0xff] }
  0x43   :  { %3443 = vmatmul.mubr.msk.bf16.gmra.mrb[16].mxu1 %vm424_vm1, %v390_v42  ;;  %v103_v42 = vld [vmem:[%s5112_s0 + $0x240] sm:$0xff] }
  0x44   :  { %3446 = vmatprep.mubr.msk.bf16.mxu1 %vm424_vm1, %v391_v50  ;;  %v402_v50 = vpack.c.bf16 %v262_v48, %v261_v47  ;;  %v125_v48 = vld [vmem:[%s5112_s0 + $0x2f0] sm:$0xff] }
  0x48   :  { %3271 = vmatmul.mubr.msk.bf16.gmra.mrb[32].mxu0 %vm424_vm1, %v304_v6  ;;  %v91_v6 = vld [vmem:[%s5112_s0 + $0x1e0] sm:$0xff] }
  0x49   :  { %3274 = vmatprep.mubr.msk.bf16.mxu0 %vm424_vm1, %v305_v7  ;;  %v92_v7 = vld [vmem:[%s5112_s0 + $0x1e8] sm:$0xff] }
  0x4a   :  { %v317_v15 = vpack.c.bf16 %v92_v7, %v91_v6  ;;  %v405_v6 = vpack.c.bf16 %v268_v5, %v267_v4  ;;  %v269_v7 = vld [vmem:[%s5112_s0 + $0x770] sm:$0xff]  ;;  %v134_v5 = vld [vmem:[%s5112_s0 + $0x338] sm:$0xff] }
  0x4b   :  { %3447 = vmatmul.mubr.msk.bf16.gmra.mrb[20].mxu1 %vm424_vm1, %v392_v54  ;;  %v107_v54 = vld [vmem:[%s5112_s0 + $0x260] sm:$0xff]  ;;  %v133_v4 = vld [vmem:[%s5112_s0 + $0x330] sm:$0xff] }
  0x4c   :  { %3450 = vmatprep.mubr.msk.bf16.mxu1 %vm424_vm1, %v393_v62  ;;  %v404_v62 = vpack.c.bf16 %v266_v60, %v265_v59  ;;  %v129_v60 = vld [vmem:[%s5112_s0 + $0x310] sm:$0xff] }
  0x50   :  { %3275 = vmatmul.mubr.msk.bf16.gmra.mrb[36].mxu0 %vm424_vm1, %v306_v18  ;;  %v95_v18 = vld [vmem:[%s5112_s0 + $0x200] sm:$0xff] }
  0x51   :  { %3278 = vmatprep.mubr.msk.bf16.mxu0 %vm424_vm1, %v307_v19  ;;  %v96_v19 = vld [vmem:[%s5112_s0 + $0x208] sm:$0xff] }
  0x52   :  { %v319_v27 = vpack.c.bf16 %v96_v19, %v95_v18  ;;  %v407_v18 = vpack.c.bf16 %v272_v17, %v271_v16  ;;  %v273_v19 = vld [vmem:[%s5112_s0 + $0x790] sm:$0xff]  ;;  %v4238_v16 = vld [vmem:[%s5115_s3] ss:$0 sm:$0xff] }
  0x53   :  { %3451 = vmatmul.mubr.msk.bf16.gmra.mrb[24].mxu1 %vm424_vm1, %v394_v2  ;;  %v111_v2 = vld [vmem:[%s5112_s0 + $0x280] sm:$0xff]  ;;  %v141_v17 = vld [vmem:[%s5112_s0 + $0x370] sm:$0xff] }
  0x54   :  { %3454 = vmatprep.mubr.msk.bf16.mxu1 %vm424_vm1, %v395_v10  ;;  %v406_v10 = vpack.c.bf16 %v270_v8, %v269_v7  ;;  %v136_v7 = vld [vmem:[%s5112_s0 + $0x348] sm:$0xff]  ;;  %v338_v8 = vpack.c.bf16 %v134_v5, %v133_v4 }
  0x58   :  { %3279 = vmatmul.mubr.msk.bf16.gmra.mrb[40].mxu0 %vm424_vm1, %v308_v30  ;;  %v99_v30 = vld [vmem:[%s5112_s0 + $0x220] sm:$0xff] }
  0x59   :  { %3282 = vmatprep.mubr.msk.bf16.mxu0 %vm424_vm1, %v309_v31  ;;  %v100_v31 = vld [vmem:[%s5112_s0 + $0x228] sm:$0xff] }
  0x5a   :  { %v321_v39 = vpack.c.bf16 %v100_v31, %v99_v30  ;;  %v409_v30 = vpack.c.bf16 %v276_v29, %v275_v28  ;;  %v277_v31 = vld [vmem:[%s5112_s0 + $0x7b0] sm:$0xff] }
  0x5b   :  { %3455 = vmatmul.mubr.msk.bf16.gmra.mrb[28].mxu1 %vm424_vm1, %v396_v14  ;;  %v115_v14 = vld [vmem:[%s5112_s0 + $0x2a0] sm:$0xff] }
  0x5c   :  { %3458 = vmatprep.mubr.msk.bf16.mxu1 %vm424_vm1, %v397_v22  ;;  %v408_v22 = vpack.c.bf16 %v274_v20, %v273_v19  ;;  %v143_v19 = vld [vmem:[%s5112_s0 + $0x380] sm:$0xff]  ;;  %v144_v20 = vld [vmem:[%s5112_s0 + $0x388] sm:$0xff] }
  0x60   :  { %3283 = vmatmul.mubr.msk.bf16.gmra.mrb[44].mxu0 %vm424_vm1, %v310_v41  ;;  %v102_v41 = vld [vmem:[%s5112_s0 + $0x238] sm:$0xff] }
  0x61   :  { %3286 = vmatprep.mubr.msk.bf16.mxu0 %vm424_vm1, %v311_v43  ;;  %v104_v43 = vld [vmem:[%s5112_s0 + $0x248] sm:$0xff]  ;;  %v322_v49 = vpack.c.bf16 %v102_v41, %v101_v40  ;;  %v279_v40 = vld [vmem:[%s5112_s0 + $0x7c0] sm:$0xff] }
  0x62   :  { %v323_v51 = vpack.c.bf16 %v104_v43, %v103_v42  ;;  %v280_v41 = vld [vmem:[%s5112_s0 + $0x7c8] sm:$0xff]  ;;  %v281_v43 = vld [vmem:[%s5112_s0 + $0x7d0] sm:$0xff] }
  0x63   :  { %3459 = vmatmul.mubr.msk.bf16.gmra.mrb[32].mxu1 %vm424_vm1, %v398_v26  ;;  %v119_v26 = vld [vmem:[%s5112_s0 + $0x2c0] sm:$0xff]  ;;  %v411_v42 = vpack.c.bf16 %v280_v41, %v279_v40 }
  0x64   :  { %3462 = vmatprep.mubr.msk.bf16.mxu1 %vm424_vm1, %v399_v34  ;;  %v410_v34 = vpack.c.bf16 %v278_v32, %v277_v31 }
  0x68   :  { %3287 = vmatmul.mubr.msk.bf16.gmra.mrb[48].mxu0 %vm424_vm1, %v312_v53  ;;  %v106_v53 = vld [vmem:[%s5112_s0 + $0x258] sm:$0xff] }
  0x69   :  { %3290 = vmatprep.mubr.msk.bf16.mxu0 %vm424_vm1, %v313_v55  ;;  %v108_v55 = vld [vmem:[%s5112_s0 + $0x268] sm:$0xff]  ;;  %v324_v61 = vpack.c.bf16 %v106_v53, %v105_v52  ;;  %v283_v52 = vld [vmem:[%s5112_s0 + $0x7e0] sm:$0xff] }
  0x6a   :  { %v325_v63 = vpack.c.bf16 %v108_v55, %v107_v54  ;;  %v284_v53 = vld [vmem:[%s5112_s0 + $0x7e8] sm:$0xff]  ;;  %v285_v55 = vld [vmem:[%s5112_s0 + $0x7f0] sm:$0xff] }
  0x6b   :  { %3463 = vmatmul.mubr.msk.bf16.gmra.mrb[36].mxu1 %vm424_vm1, %v400_v38  ;;  %v123_v38 = vld [vmem:[%s5112_s0 + $0x2e0] sm:$0xff]  ;;  %v413_v54 = vpack.c.bf16 %v284_v53, %v283_v52 }
  0x6c   :  { %3466 = vmatprep.mubr.msk.bf16.mxu1 %vm424_vm1, %v401_v46  ;;  %v412_v46 = vpack.c.bf16 %v282_v44, %v281_v43 }
  0x70   :  { %3291 = vmatmul.mubr.msk.bf16.gmra.mrb[52].mxu0 %vm424_vm1, %v314_v1  ;;  %v110_v1 = vld [vmem:[%s5112_s0 + $0x278] sm:$0xff] }
  0x71   :  { %3294 = vmatprep.mubr.msk.bf16.mxu0 %vm424_vm1, %v315_v3  ;;  %v112_v3 = vld [vmem:[%s5112_s0 + $0x288] sm:$0xff]  ;;  %v326_v9 = vpack.c.bf16 %v110_v1, %v109_v0 }
  0x72   :  { %v327_v11 = vpack.c.bf16 %v112_v3, %v111_v2  ;;  %v2127_v0 = vld [vmem:[%s5113_s1 + $0x8] sm:$0xff] }
  0x73   :  { %3467 = vmatmul.mubr.msk.bf16.gmra.mrb[40].mxu1 %vm424_vm1, %v402_v50  ;;  %v127_v50 = vld [vmem:[%s5112_s0 + $0x300] sm:$0xff]  ;;  %v2143_v1 = vpack.c.bf16 %v2127_v0, %v2127_v0 }
  0x74   :  { %3470 = vmatprep.mubr.msk.bf16.mxu1 %vm424_vm1, %v403_v58  ;;  %v414_v58 = vpack.c.bf16 %v286_v56, %v285_v55  ;;  %v149_v55 = vld [vmem:[%s5112_s0 + $0x3b0] sm:$0xff]  ;;  %v150_v56 = vld [vmem:[%s5112_s0 + $0x3b8] sm:$0xff] }
  0x75   :  { %v346_v0 = vpack.c.bf16 %v150_v56, %v149_v55  ;;  %v162_v55 = vld [vmem:[%s5112_s0 + $0x418] sm:$0xff] }
  0x78   :  { %3295 = vmatmul.mubr.msk.bf16.gmra.mrb[56].mxu0 %vm424_vm1, %v316_v13  ;;  %v114_v13 = vld [vmem:[%s5112_s0 + $0x298] sm:$0xff] }
  0x79   :  { %3298 = vmatprep.mubr.msk.bf16.mxu0 %vm424_vm1, %v317_v15  ;;  %v116_v15 = vld [vmem:[%s5112_s0 + $0x2a8] sm:$0xff]  ;;  %v328_v21 = vpack.c.bf16 %v114_v13, %v113_v12  ;;  %v139_v12 = vld [vmem:[%s5112_s0 + $0x360] sm:$0xff] }
  0x7a   :  { %v329_v23 = vpack.c.bf16 %v116_v15, %v115_v14  ;;  %v140_v13 = vld [vmem:[%s5112_s0 + $0x368] sm:$0xff] }
  0x7b   :  { %3471 = vmatmul.mubr.msk.bf16.gmra.mrb[44].mxu1 %vm424_vm1, %v404_v62  ;;  %v131_v62 = vld [vmem:[%s5112_s0 + $0x320] sm:$0xff]  ;;  %v341_v15 = vpack.c.bf16 %v140_v13, %v139_v12  ;;  %v154_v12 = vld [vmem:[%s5112_s0 + $0x3d8] sm:$0xff] }
  0x7c   :  { %3474 = vmatprep.mubr.msk.bf16.mxu1 %vm424_vm1, %v405_v6  ;;  %v135_v6 = vld [vmem:[%s5112_s0 + $0x340] sm:$0xff] }
  0x80   :  { %3299 = vmatmul.mubr.msk.bf16.gmra.mrb[60].mxu0 %vm424_vm1, %v318_v25  ;;  %v118_v25 = vld [vmem:[%s5112_s0 + $0x2b8] sm:$0xff] }
  0x81   :  { %3302 = vmatprep.mubr.msk.bf16.mxu0 %vm424_vm1, %v319_v27  ;;  %v120_v27 = vld [vmem:[%s5112_s0 + $0x2c8] sm:$0xff]  ;;  %v330_v33 = vpack.c.bf16 %v118_v25, %v117_v24 }
  0x82   :  { %v331_v35 = vpack.c.bf16 %v120_v27, %v119_v26  ;;  %v343_v27 = vpack.c.bf16 %v144_v20, %v143_v19 }
  0x83   :  { %3475 = vmatmul.mubr.msk.bf16.gmra.mrb[48].mxu1 %vm424_vm1, %v406_v10  ;;  %v137_v10 = vld [vmem:[%s5112_s0 + $0x350] sm:$0xff] }
  0x84   :  { %3478 = vmatprep.mubr.msk.bf16.mxu1 %vm424_vm1, %v407_v18  ;;  %v142_v18 = vld [vmem:[%s5112_s0 + $0x378] sm:$0xff] }
  0x85   :  { %v342_v24 = vpack.c.bf16 %v142_v18, %v141_v17 }
  0x88   :  { %3303 = vmatmul.mubr.msk.bf16.gmra.mrb[64].mxu0 %vm424_vm1, %v320_v37  ;;  %v122_v37 = vld [vmem:[%s5112_s0 + $0x2d8] sm:$0xff] }
  0x89   :  { %3306 = vmatprep.mubr.msk.bf16.mxu0 %vm424_vm1, %v321_v39  ;;  %v124_v39 = vld [vmem:[%s5112_s0 + $0x2e8] sm:$0xff]  ;;  %v332_v45 = vpack.c.bf16 %v122_v37, %v121_v36  ;;  %v146_v36 = vld [vmem:[%s5112_s0 + $0x398] sm:$0xff] }
  0x8a   :  { %v333_v47 = vpack.c.bf16 %v124_v39, %v123_v38  ;;  %v147_v38 = vld [vmem:[%s5112_s0 + $0x3a0] sm:$0xff]  ;;  %v148_v39 = vld [vmem:[%s5112_s0 + $0x3a8] sm:$0xff] }
  0x8b   :  { %3479 = vmatmul.mubr.msk.bf16.gmra.mrb[52].mxu1 %vm424_vm1, %v408_v22 }
  0x8c   :  { %3482 = vmatprep.mubr.msk.bf16.mxu1 %vm424_vm1, %v409_v30 }
  0x90   :  { %3307 = vmatmul.mubr.msk.bf16.gmra.mrb[68].mxu0 %vm424_vm1, %v322_v49  ;;  %v126_v49 = vld [vmem:[%s5112_s0 + $0x2f8] sm:$0xff] }
  0x91   :  { %3310 = vmatprep.mubr.msk.bf16.mxu0 %vm424_vm1, %v323_v51  ;;  %v128_v51 = vld [vmem:[%s5112_s0 + $0x308] sm:$0xff]  ;;  %v334_v57 = vpack.c.bf16 %v126_v49, %v125_v48 }
  0x92   :  { %v335_v59 = vpack.c.bf16 %v128_v51, %v127_v50 }
  0x93   :  { %3483 = vmatmul.mubr.msk.bf16.gmra.mrb[56].mxu1 %vm424_vm1, %v410_v34 }
  0x94   :  { %3486 = vmatprep.mubr.msk.bf16.mxu1 %vm424_vm1, %v411_v42 }
  0x98   :  { %3311 = vmatmul.mubr.msk.bf16.gmra.mrb[72].mxu0 %vm424_vm1, %v324_v61  ;;  %v130_v61 = vld [vmem:[%s5112_s0 + $0x318] sm:$0xff] }
  0x99   :  { %3314 = vmatprep.mubr.msk.bf16.mxu0 %vm424_vm1, %v325_v63  ;;  %v132_v63 = vld [vmem:[%s5112_s0 + $0x328] sm:$0xff]  ;;  %v336_v2 = vpack.c.bf16 %v130_v61, %v129_v60 }
  0x9a   :  { %v337_v3 = vpack.c.bf16 %v132_v63, %v131_v62 }
  0x9b   :  { %3487 = vmatmul.mubr.msk.bf16.gmra.mrb[60].mxu1 %vm424_vm1, %v412_v46 }
  0x9c   :  { %3490 = vmatprep.mubr.msk.bf16.mxu1 %vm424_vm1, %v413_v54 }
  0xa0   :  { %3315 = vmatmul.mubr.msk.bf16.gmra.mrb[76].mxu0 %vm424_vm1, %v326_v9  ;;  %v339_v9 = vpack.c.bf16 %v136_v7, %v135_v6 }
  0xa1   :  { %3318 = vmatprep.mubr.msk.bf16.mxu0 %vm424_vm1, %v327_v11  ;;  %v138_v11 = vld [vmem:[%s5112_s0 + $0x358] sm:$0xff] }
  0xa2   :  { %v340_v14 = vpack.c.bf16 %v138_v11, %v137_v10  ;;  %v153_v11 = vld [vmem:[%s5112_s0 + $0x3d0] sm:$0xff] }
  0xa3   :  { %3491 = vmatmul.mubr.msk.bf16.gmra.mrb[64].mxu1 %vm424_vm1, %v414_v58  ;;  %v151_v58 = vld [vmem:[%s5112_s0 + $0x3c0] sm:$0xff] }
  0xa4   :  { %2318 = vmatprep.mubr.bf16.mxu1 %v2143_v1 }
  0xa8   :  { %3319 = vmatmul.mubr.msk.bf16.gmra.mrb[80].mxu0 %vm424_vm1, %v328_v21 }
  0xa9   :  { %3322 = vmatprep.mubr.msk.bf16.mxu0 %vm424_vm1, %v329_v23 }
  0xb0   :  { %3323 = vmatmul.mubr.msk.bf16.gmra.mrb[84].mxu0 %vm424_vm1, %v330_v33 }
  0xb1   :  { %3326 = vmatprep.mubr.msk.bf16.mxu0 %vm424_vm1, %v331_v35  ;;  %v145_v35 = vld [vmem:[%s5112_s0 + $0x390] sm:$0xff] }
  0xb2   :  { %v344_v44 = vpack.c.bf16 %v146_v36, %v145_v35  ;;  %v159_v35 = vld [vmem:[%s5112_s0 + $0x400] sm:$0xff]  ;;  %v160_v36 = vld [vmem:[%s5112_s0 + $0x408] sm:$0xff] }
  0xb8   :  { %3327 = vmatmul.mubr.msk.bf16.gmra.mrb[88].mxu0 %vm424_vm1, %v332_v45 }
  0xb9   :  { %3330 = vmatprep.mubr.msk.bf16.mxu0 %vm424_vm1, %v333_v47  ;;  %v345_v47 = vpack.c.bf16 %v148_v39, %v147_v38 }
  0xc0   :  { %3331 = vmatmul.mubr.msk.bf16.gmra.mrb[92].mxu0 %vm424_vm1, %v334_v57 }
  0xc1   :  { %3334 = vmatprep.mubr.msk.bf16.mxu0 %vm424_vm1, %v335_v59  ;;  %v152_v59 = vld [vmem:[%s5112_s0 + $0x3c8] sm:$0xff] }
  0xc8   :  { %3335 = vmatmul.mubr.msk.bf16.gmra.mrb[96].mxu0 %vm424_vm1, %v336_v2 }
  0xc9   :  { %3338 = vmatprep.mubr.msk.bf16.mxu0 %vm424_vm1, %v337_v3  ;;  %v347_v3 = vpack.c.bf16 %v152_v59, %v151_v58  ;;  %v163_v58 = vld [vmem:[%s5112_s0 + $0x420] sm:$0xff]  ;;  %v164_v59 = vld [vmem:[%s5112_s0 + $0x428] sm:$0xff] }
  0xd0   :  { %3339 = vmatmul.mubr.msk.bf16.gmra.mrb[100].mxu0 %vm424_vm1, %v338_v8 }
  0xd1   :  { %3342 = vmatprep.mubr.msk.bf16.mxu0 %vm424_vm1, %v339_v9 }
  0xd8   :  { %3343 = vmatmul.mubr.msk.bf16.gmra.mrb[104].mxu0 %vm424_vm1, %v340_v14  ;;  %v155_v14 = vld [vmem:[%s5112_s0 + $0x3e0] sm:$0xff] }
  0xd9   :  { %3346 = vmatprep.mubr.msk.bf16.mxu0 %vm424_vm1, %v341_v15  ;;  %v156_v15 = vld [vmem:[%s5112_s0 + $0x3e8] sm:$0xff] }
  0xdb   :  { %v3240_v21 = vpop.f32.mrb[0].mxu0 }
  0xdc   :  { %v856_v22 = vadd.f32 %v3240_v21, %v4238_v16  ;;  %v847_v23 = vpop.f32.mrb[1].mxu0  ;;  %v348_v21 = vpack.c.bf16 %v154_v12, %v153_v11  ;;  %v165_v12 = vld [vmem:[%s5112_s0 + $0x430] sm:$0xff] }
  0xdd   :  { %v848_v25 = vadd.f32 %v4238_v16, %v847_v23  ;;  %v3241_v26 = vpop.f32.mrb[2].mxu0 }
  0xde   :  { %v859_v28 = vadd.f32 %v3241_v26, %v4238_v16  ;;  %v850_v29 = vpop.f32.mrb[3].mxu0  ;;  %v1872_v31 = vmax.f32 %v856_v22, 0.0 }
  0xdf   :  { %v851_v30 = vadd.f32 %v4238_v16, %v850_v29  ;;  %v1870_v33 = vmax.f32 %v848_v25, 0.0 }
  0xe0   :  { %v1873_v32 = vmax.f32 %v859_v28, 0.0  ;;  %3347 = vmatmul.mubr.msk.bf16.gmra.mrb[108].mxu0 %vm424_vm1, %v342_v24  ;;  %v349_v24 = vpack.c.bf16 %v156_v15, %v155_v14  ;;  %v166_v14 = vld [vmem:[%s5112_s0 + $0x438] sm:$0xff]  ;;  %v167_v15 = vld [vmem:[%s5112_s0 + $0x440] sm:$0xff] }
  0xe1   :  { %v1871_v34 = vmax.f32 %v851_v30, 0.0  ;;  %3350 = vmatprep.mubr.msk.bf16.mxu0 %vm424_vm1, %v343_v27 }
  0xe2   :  { %v4265_v37 = vpack.c.bf16 %v1873_v32, %v1872_v31  ;;  %v157_v32 = vld [vmem:[%s5112_s0 + $0x3f0] sm:$0xff] }
  0xe3   :  { %v4273_v40 = vpack.c.bf16 %v1871_v34, %v1870_v33  ;;  %v3244_v41 = vpop.f32.mrb[4].mxu0  ;;  %v158_v33 = vld [vmem:[%s5112_s0 + $0x3f8] sm:$0xff] }
  0xe4   :  { %v872_v42 = vadd.f32 %v3244_v41, %v4238_v16  ;;  %v863_v43 = vpop.f32.mrb[5].mxu0 }
  0xe5   :  { %v864_v45 = vadd.f32 %v4238_v16, %v863_v43  ;;  %v3245_v46 = vpop.f32.mrb[6].mxu0  ;;  %v350_v43 = vpack.c.bf16 %v158_v33, %v157_v32  ;;  %v169_v33 = vld [vmem:[%s5112_s0 + $0x450] sm:$0xff] }
  0xe6   :  { %v875_v48 = vadd.f32 %v3245_v46, %v4238_v16  ;;  %v866_v49 = vpop.f32.mrb[7].mxu0  ;;  %v1876_v51 = vmax.f32 %v872_v42, 0.0  ;;  %v351_v46 = vpack.c.bf16 %v160_v36, %v159_v35  ;;  %v170_v35 = vld [vmem:[%s5112_s0 + $0x458] sm:$0xff]  ;;  %v171_v36 = vld [vmem:[%s5112_s0 + $0x460] sm:$0xff] }
  0xe7   :  { %v867_v50 = vadd.f32 %v4238_v16, %v866_v49  ;;  %v1874_v53 = vmax.f32 %v864_v45, 0.0 }
  0xe8   :  { %v1877_v52 = vmax.f32 %v875_v48, 0.0  ;;  %3351 = vmatmul.mubr.msk.bf16.gmra.mrb[112].mxu0 %vm424_vm1, %v344_v44 }
  0xe9   :  { %v1875_v54 = vmax.f32 %v867_v50, 0.0  ;;  %3354 = vmatprep.mubr.msk.bf16.mxu0 %vm424_vm1, %v345_v47 }
  0xea   :  { %v4287_v57 = vpack.c.bf16 %v1877_v52, %v1876_v51 }
  0xeb   :  { %v4295_v60 = vpack.c.bf16 %v1875_v54, %v1874_v53  ;;  %v3248_v61 = vpop.f32.mrb[8].mxu0  ;;  %v161_v54 = vld [vmem:[%s5112_s0 + $0x410] sm:$0xff] }
  0xec   :  { %v888_v62 = vadd.f32 %v3248_v61, %v4238_v16  ;;  %v879_v63 = vpop.f32.mrb[9].mxu0 }
  0xed   :  { %v880_v1 = vadd.f32 %v4238_v16, %v879_v63  ;;  %v3249_v2 = vpop.f32.mrb[10].mxu0 }
  0xee   :  { %v891_v4 = vadd.f32 %v3249_v2, %v4238_v16  ;;  %v882_v5 = vpop.f32.mrb[11].mxu0  ;;  %v1880_v7 = vmax.f32 %v888_v62, 0.0 }
  0xef   :  { %v883_v6 = vadd.f32 %v4238_v16, %v882_v5  ;;  %v1878_v9 = vmax.f32 %v880_v1, 0.0  ;;  %v352_v1 = vpack.c.bf16 %v162_v55, %v161_v54  ;;  %v173_v55 = vld [vmem:[%s5112_s0 + $0x470] sm:$0xff] }
  0xf0   :  { %v1881_v8 = vmax.f32 %v891_v4, 0.0  ;;  %3355 = vmatmul.mubr.msk.bf16.gmra.mrb[116].mxu0 %vm424_vm1, %v346_v0  ;;  %v353_v4 = vpack.c.bf16 %v164_v59, %v163_v58  ;;  %v175_v58 = vld [vmem:[%s5112_s0 + $0x480] sm:$0xff]  ;;  %v176_v59 = vld [vmem:[%s5112_s0 + $0x488] sm:$0xff] }
  0xf1   :  { %v1879_v10 = vmax.f32 %v883_v6, 0.0  ;;  %3358 = vmatprep.mubr.msk.bf16.mxu0 %vm424_vm1, %v347_v3 }
  0xf2   :  { %v4309_v13 = vpack.c.bf16 %v1881_v8, %v1880_v7 }
  0xf3   :  { %v4317_v17 = vpack.c.bf16 %v1879_v10, %v1878_v9  ;;  %v3252_v18 = vpop.f32.mrb[12].mxu0 }
  0xf4   :  { %v904_v19 = vadd.f32 %v3252_v18, %v4238_v16  ;;  %v895_v20 = vpop.f32.mrb[13].mxu0  ;;  %v168_v18 = vld [vmem:[%s5112_s0 + $0x448] sm:$0xff] }
  0xf5   :  { %v896_v22 = vadd.f32 %v4238_v16, %v895_v20  ;;  %v3253_v23 = vpop.f32.mrb[14].mxu0 }
  0xf6   :  { %v907_v25 = vadd.f32 %v3253_v23, %v4238_v16  ;;  %v898_v26 = vpop.f32.mrb[15].mxu0  ;;  %v1884_v28 = vmax.f32 %v904_v19, 0.0  ;;  %v354_v23 = vpack.c.bf16 %v166_v14, %v165_v12  ;;  %v178_v14 = vld [vmem:[%s5112_s0 + $0x498] sm:$0xff] }
  0xf7   :  { %v899_v27 = vadd.f32 %v4238_v16, %v898_v26  ;;  %v1882_v30 = vmax.f32 %v896_v22, 0.0  ;;  %v355_v26 = vpack.c.bf16 %v168_v18, %v167_v15  ;;  %v179_v18 = vld [vmem:[%s5112_s0 + $0x4a0] sm:$0xff] }
  0xf8   :  { %v1885_v29 = vmax.f32 %v907_v25, 0.0  ;;  %3359 = vmatmul.mubr.msk.bf16.gmra.mrb[120].mxu0 %vm424_vm1, %v348_v21 }
  0xf9   :  { %v1883_v31 = vmax.f32 %v899_v27, 0.0  ;;  %3362 = vmatprep.mubr.msk.bf16.mxu0 %vm424_vm1, %v349_v24 }
  0xfa   :  { %v4331_v34 = vpack.c.bf16 %v1885_v29, %v1884_v28 }
  0xfb   :  { %v4339_v38 = vpack.c.bf16 %v1883_v31, %v1882_v30  ;;  %v3256_v39 = vpop.f32.mrb[16].mxu0 }
  0xfc   :  { %v920_v41 = vadd.f32 %v3256_v39, %v4238_v16  ;;  %v911_v42 = vpop.f32.mrb[17].mxu0  ;;  %v172_v39 = vld [vmem:[%s5112_s0 + $0x468] sm:$0xff] }
  0xfd   :  { %v912_v44 = vadd.f32 %v4238_v16, %v911_v42  ;;  %v3257_v45 = vpop.f32.mrb[18].mxu0 }
  0xfe   :  { %v923_v47 = vadd.f32 %v3257_v45, %v4238_v16  ;;  %v914_v48 = vpop.f32.mrb[19].mxu0  ;;  %v1888_v50 = vmax.f32 %v920_v41, 0.0  ;;  %v356_v45 = vpack.c.bf16 %v170_v35, %v169_v33  ;;  %v181_v35 = vld [vmem:[%s5112_s0 + $0x4b0] sm:$0xff] }
  0xff   :  { %v915_v49 = vadd.f32 %v4238_v16, %v914_v48  ;;  %v1886_v52 = vmax.f32 %v912_v44, 0.0  ;;  %v357_v48 = vpack.c.bf16 %v172_v39, %v171_v36  ;;  %v183_v39 = vld [vmem:[%s5112_s0 + $0x4c0] sm:$0xff] }
 0x100   :  { %v1889_v51 = vmax.f32 %v923_v47, 0.0  ;;  %3363 = vmatmul.mubr.msk.bf16.gmra.mrb[124].mxu0 %vm424_vm1, %v350_v43 }
 0x101   :  { %v1887_v53 = vmax.f32 %v915_v49, 0.0  ;;  %3366 = vmatprep.mubr.msk.bf16.mxu0 %vm424_vm1, %v351_v46 }
 0x102   :  { %v2167_v56 = vpack.c.bf16 %v1889_v51, %v1888_v50 }
 0x103   :  { %v2166_v61 = vpack.c.bf16 %v1887_v53, %v1886_v52  ;;  %v3260_v62 = vpop.f32.mrb[20].mxu0 }
 0x104   :  { %v936_v63 = vadd.f32 %v3260_v62, %v4238_v16  ;;  %v927_v0 = vpop.f32.mrb[21].mxu0 }
 0x105   :  { %v928_v2 = vadd.f32 %v4238_v16, %v927_v0  ;;  %v3261_v3 = vpop.f32.mrb[22].mxu0  ;;  %3052 = vmatprep.subr.bf16.mxu1 %v2166_v61 }
 0x106   :  { %v939_v5 = vadd.f32 %v3261_v3, %v4238_v16  ;;  %v930_v6 = vpop.f32.mrb[23].mxu0  ;;  %3053 = vmatpush3.bf16.msra.mxu1 %v4273_v40  ;;  %v1892_v8 = vmax.f32 %v936_v63, 0.0 }
 0x107   :  { %v931_v7 = vadd.f32 %v4238_v16, %v930_v6  ;;  %3054 = vmatprep.subr.bf16.mxu1 %v2167_v56  ;;  %v1890_v10 = vmax.f32 %v928_v2, 0.0  ;;  %v174_v56 = vld [vmem:[%s5112_s0 + $0x478] sm:$0xff]  ;;  %v2126_v6 = vld [vmem:[%s5113_s1] sm:$0xff] }
 0x108   :  { %v1893_v9 = vmax.f32 %v939_v5, 0.0  ;;  %3367 = vmatmul.mubr.msk.bf16.gmra.mrb[128].mxu0 %vm424_vm1, %v352_v1  ;;  %v358_v1 = vpack.c.bf16 %v174_v56, %v173_v55  ;;  %v185_v56 = vld [vmem:[%s5112_s0 + $0x4d0] sm:$0xff] }
 0x109   :  { %v1891_v11 = vmax.f32 %v931_v7, 0.0  ;;  %3370 = vmatprep.mubr.msk.bf16.mxu0 %vm424_vm1, %v353_v4  ;;  %v359_v4 = vpack.c.bf16 %v176_v59, %v175_v58  ;;  %v187_v59 = vld [vmem:[%s5112_s0 + $0x4e0] sm:$0xff] }
 0x10a   :  { %v2169_v40 = vpack.c.bf16 %v1893_v9, %v1892_v8  ;;  %3055 = vmatpush3.bf16.msra.mxu1 %v4265_v37  ;;  %v2129_v8 = vld [vmem:[%s5113_s1 + $0x18] sm:$0xff] }
 0x10b   :  { %v2168_v19 = vpack.c.bf16 %v1891_v11, %v1890_v10  ;;  %v3264_v20 = vpop.f32.mrb[24].mxu0 }
 0x10c   :  { %v952_v21 = vadd.f32 %v3264_v20, %v4238_v16  ;;  %v943_v22 = vpop.f32.mrb[25].mxu0  ;;  %v2145_v20 = vpack.c.bf16 %v2129_v8, %v2129_v8 }
 0x10d   :  { %v944_v24 = vadd.f32 %v4238_v16, %v943_v22  ;;  %v3265_v25 = vpop.f32.mrb[26].mxu0  ;;  %3056 = vmatprep.subr.bf16.mxu1 %v2168_v19  ;;  %v180_v19 = vld [vmem:[%s5112_s0 + $0x4a8] sm:$0xff] }
 0x10e   :  { %v955_v37 = vadd.f32 %v3265_v25, %v4238_v16  ;;  %v946_v27 = vpop.f32.mrb[27].mxu0  ;;  %3057 = vmatpush3.bf16.msra.mxu1 %v4295_v60  ;;  %v1896_v29 = vmax.f32 %v952_v21, 0.0 }
 0x10f   :  { %v947_v28 = vadd.f32 %v4238_v16, %v946_v27  ;;  %3058 = vmatprep.subr.bf16.mxu1 %v2169_v40  ;;  %v1894_v31 = vmax.f32 %v944_v24, 0.0  ;;  %v2142_v40 = vpack.c.bf16 %v2126_v6, %v2126_v6 }
 0x110   :  { %v1897_v30 = vmax.f32 %v955_v37, 0.0  ;;  %3371 = vmatmul.mubr.msk.bf16.gmra.mrb[132].mxu0 %vm424_vm1, %v354_v23 }
 0x111   :  { %v1895_v32 = vmax.f32 %v947_v28, 0.0  ;;  %3374 = vmatprep.mubr.msk.bf16.mxu0 %vm424_vm1, %v355_v26 }
 0x112   :  { %v2171_v60 = vpack.c.bf16 %v1897_v30, %v1896_v29  ;;  %3059 = vmatpush3.bf16.msra.mxu1 %v4287_v57 }
 0x113   :  { %v2170_v41 = vpack.c.bf16 %v1895_v32, %v1894_v31  ;;  %v3268_v42 = vpop.f32.mrb[28].mxu0 }
 0x114   :  { %v968_v43 = vadd.f32 %v3268_v42, %v4238_v16  ;;  %v959_v44 = vpop.f32.mrb[29].mxu0 }
 0x115   :  { %v960_v46 = vadd.f32 %v4238_v16, %v959_v44  ;;  %v3269_v47 = vpop.f32.mrb[30].mxu0  ;;  %3060 = vmatprep.subr.bf16.mxu1 %v2170_v41  ;;  %v184_v41 = vld [vmem:[%s5112_s0 + $0x4c8] sm:$0xff] }
 0x116   :  { %v971_v57 = vadd.f32 %v3269_v47, %v4238_v16  ;;  %v962_v49 = vpop.f32.mrb[31].mxu0  ;;  %3061 = vmatpush3.bf16.msra.mxu1 %v4317_v17  ;;  %v1900_v51 = vmax.f32 %v968_v43, 0.0 }
 0x117   :  { %v963_v50 = vadd.f32 %v4238_v16, %v962_v49  ;;  %3062 = vmatprep.subr.bf16.mxu1 %v2171_v60  ;;  %v1898_v53 = vmax.f32 %v960_v46, 0.0  ;;  %v182_v60 = vld [vmem:[%s5112_s0 + $0x4b8] sm:$0xff] }
 0x118   :  { %v1901_v52 = vmax.f32 %v971_v57, 0.0  ;;  %3375 = vmatmul.mubr.msk.bf16.gmra.mrb[136].mxu0 %vm424_vm1, %v356_v45  ;;  %v362_v46 = vpack.c.bf16 %v182_v60, %v181_v35  ;;  %v363_v57 = vpack.c.bf16 %v184_v41, %v183_v39  ;;  %v194_v35 = vld [vmem:[%s5112_s0 + $0x518] sm:$0xff]  ;;  %v195_v39 = vld [vmem:[%s5112_s0 + $0x520] sm:$0xff]  ;;  %v196_v41 = vld [vmem:[%s5112_s0 + $0x528] sm:$0xff] }
 0x119   :  { %v1899_v54 = vmax.f32 %v963_v50, 0.0  ;;  %3378 = vmatprep.mubr.msk.bf16.mxu0 %vm424_vm1, %v357_v48 }
 0x11a   :  { %v2173_v17 = vpack.c.bf16 %v1901_v52, %v1900_v51  ;;  %3063 = vmatpush3.bf16.msra.mxu1 %v4309_v13 }
 0x11b   :  { %v2172_v61 = vpack.c.bf16 %v1899_v54, %v1898_v53  ;;  %v3272_v62 = vpop.f32.mrb[32].mxu0 }
 0x11c   :  { %v984_v63 = vadd.f32 %v3272_v62, %v4238_v16  ;;  %v975_v0 = vpop.f32.mrb[33].mxu0 }
 0x11d   :  { %v976_v2 = vadd.f32 %v4238_v16, %v975_v0  ;;  %v3273_v3 = vpop.f32.mrb[34].mxu0  ;;  %3064 = vmatprep.subr.bf16.mxu1 %v2172_v61  ;;  %v188_v61 = vld [vmem:[%s5112_s0 + $0x4e8] sm:$0xff] }
 0x11e   :  { %v987_v13 = vadd.f32 %v3273_v3, %v4238_v16  ;;  %v978_v5 = vpop.f32.mrb[35].mxu0  ;;  %3065 = vmatpush3.bf16.msra.mxu1 %v4339_v38  ;;  %v1904_v9 = vmax.f32 %v984_v63, 0.0  ;;  %v177_v38 = vld [vmem:[%s5112_s0 + $0x490] sm:$0xff] }
 0x11f   :  { %v979_v7 = vadd.f32 %v4238_v16, %v978_v5  ;;  %3066 = vmatprep.subr.bf16.mxu1 %v2173_v17  ;;  %v1902_v11 = vmax.f32 %v976_v2, 0.0  ;;  %v360_v25 = vpack.c.bf16 %v178_v14, %v177_v38  ;;  %v186_v17 = vld [vmem:[%s5112_s0 + $0x4d8] sm:$0xff] }
 0x120   :  { %v1905_v10 = vmax.f32 %v987_v13, 0.0  ;;  %3379 = vmatmul.mubr.msk.bf16.gmra.mrb[140].mxu0 %vm424_vm1, %v358_v1  ;;  %v364_v2 = vpack.c.bf16 %v186_v17, %v185_v56  ;;  %v365_v13 = vpack.c.bf16 %v188_v61, %v187_v59  ;;  %v190_v38 = vld [vmem:[%s5112_s0 + $0x4f8] sm:$0xff]  ;;  %v197_v17 = vld [vmem:[%s5112_s0 + $0x530] sm:$0xff]  ;;  %v199_v61 = vld [vmem:[%s5112_s0 + $0x540] sm:$0xff] }
 0x121   :  { %v1903_v12 = vmax.f32 %v979_v7, 0.0  ;;  %3382 = vmatprep.mubr.msk.bf16.mxu0 %vm424_vm1, %v359_v4  ;;  %v198_v59 = vld [vmem:[%s5112_s0 + $0x538] sm:$0xff] }
 0x122   :  { %v4438_v15 = vpack.c.bf16 %v1905_v10, %v1904_v9  ;;  %3067 = vmatpush3.bf16.msra.mxu1 %v4331_v34  ;;  %v361_v34 = vpack.c.bf16 %v180_v19, %v179_v18  ;;  %v192_v18 = vld [vmem:[%s5112_s0 + $0x508] sm:$0xff] }
 0x123   :  { %v4447_v21 = vpack.c.bf16 %v1903_v12, %v1902_v11  ;;  %v3276_v22 = vpop.f32.mrb[36].mxu0  ;;  %v189_v12 = vld [vmem:[%s5112_s0 + $0x4f0] sm:$0xff] }
 0x124   :  { %v1000_v23 = vadd.f32 %v3276_v22, %v4238_v16  ;;  %v991_v24 = vpop.f32.mrb[37].mxu0 }
 0x125   :  { %v992_v26 = vadd.f32 %v4238_v16, %v991_v24  ;;  %v3277_v37 = vpop.f32.mrb[38].mxu0  ;;  %2319 = vmatmul.mubr.bf16.vlgmr.msra.gmra.mrb[68].mxu1 %v2142_v40  ;;  %v191_v40 = vld [vmem:[%s5112_s0 + $0x500] sm:$0xff]  ;;  %v366_v24 = vpack.c.bf16 %v190_v38, %v189_v12  ;;  %v201_v38 = vld [vmem:[%s5112_s0 + $0x550] sm:$0xff] }
 0x126   :  { %v1003_v27 = vadd.f32 %v3277_v37, %v4238_v16  ;;  %v994_v28 = vpop.f32.mrb[39].mxu0  ;;  %2358 = vmatprep.mubr.bf16.mxu1 %v2145_v20  ;;  %v1908_v30 = vmax.f32 %v1000_v23, 0.0  ;;  %v367_v37 = vpack.c.bf16 %v192_v18, %v191_v40  ;;  %v202_v40 = vld [vmem:[%s5112_s0 + $0x558] sm:$0xff]  ;;  %v203_v18 = vld [vmem:[%s5112_s0 + $0x560] sm:$0xff] }
 0x127   :  { %v995_v29 = vadd.f32 %v4238_v16, %v994_v28  ;;  %v1906_v32 = vmax.f32 %v992_v26, 0.0 }
 0x128   :  { %v1909_v31 = vmax.f32 %v1003_v27, 0.0  ;;  %3383 = vmatmul.mubr.msk.bf16.gmra.mrb[144].mxu0 %vm424_vm1, %v360_v25 }
 0x129   :  { %v1907_v33 = vmax.f32 %v995_v29, 0.0  ;;  %3386 = vmatprep.mubr.msk.bf16.mxu0 %vm424_vm1, %v361_v34 }
 0x12a   :  { %v4461_v36 = vpack.c.bf16 %v1909_v31, %v1908_v30 }
 0x12b   :  { %v4469_v42 = vpack.c.bf16 %v1907_v33, %v1906_v32  ;;  %v3280_v43 = vpop.f32.mrb[40].mxu0  ;;  %v193_v33 = vld [vmem:[%s5112_s0 + $0x510] sm:$0xff] }
 0x12c   :  { %v1016_v44 = vadd.f32 %v3280_v43, %v4238_v16  ;;  %v1007_v45 = vpop.f32.mrb[41].mxu0 }
 0x12d   :  { %v1008_v47 = vadd.f32 %v4238_v16, %v1007_v45  ;;  %v3281_v48 = vpop.f32.mrb[42].mxu0 }
 0x12e   :  { %v1019_v49 = vadd.f32 %v3281_v48, %v4238_v16  ;;  %v1010_v50 = vpop.f32.mrb[43].mxu0  ;;  %v1912_v52 = vmax.f32 %v1016_v44, 0.0 }
 0x12f   :  { %v1011_v51 = vadd.f32 %v4238_v16, %v1010_v50  ;;  %v1910_v54 = vmax.f32 %v1008_v47, 0.0  ;;  %v368_v47 = vpack.c.bf16 %v194_v35, %v193_v33  ;;  %v205_v35 = vld [vmem:[%s5112_s0 + $0x570] sm:$0xff] }
 0x130   :  { %v1913_v53 = vmax.f32 %v1019_v49, 0.0  ;;  %3387 = vmatmul.mubr.msk.bf16.gmra.mrb[148].mxu0 %vm424_vm1, %v362_v46  ;;  %v369_v49 = vpack.c.bf16 %v196_v41, %v195_v39  ;;  %v207_v39 = vld [vmem:[%s5112_s0 + $0x580] sm:$0xff]  ;;  %v208_v41 = vld [vmem:[%s5112_s0 + $0x588] sm:$0xff] }
 0x131   :  { %v1911_v55 = vmax.f32 %v1011_v51, 0.0  ;;  %3390 = vmatprep.mubr.msk.bf16.mxu0 %vm424_vm1, %v363_v57 }
 0x132   :  { %v4483_v58 = vpack.c.bf16 %v1913_v53, %v1912_v52 }
 0x133   :  { %v4491_v62 = vpack.c.bf16 %v1911_v55, %v1910_v54  ;;  %v3284_v63 = vpop.f32.mrb[44].mxu0 }
 0x134   :  { %v1032_v0 = vadd.f32 %v3284_v63, %v4238_v16  ;;  %v1023_v1 = vpop.f32.mrb[45].mxu0  ;;  %v200_v63 = vld [vmem:[%s5112_s0 + $0x548] sm:$0xff] }
 0x135   :  { %v1024_v3 = vadd.f32 %v4238_v16, %v1023_v1  ;;  %v3285_v4 = vpop.f32.mrb[46].mxu0 }
 0x136   :  { %v1035_v5 = vadd.f32 %v3285_v4, %v4238_v16  ;;  %v1026_v6 = vpop.f32.mrb[47].mxu0  ;;  %v1916_v8 = vmax.f32 %v1032_v0, 0.0  ;;  %v370_v4 = vpack.c.bf16 %v198_v59, %v197_v17  ;;  %v210_v59 = vld [vmem:[%s5112_s0 + $0x598] sm:$0xff] }
 0x137   :  { %v1027_v7 = vadd.f32 %v4238_v16, %v1026_v6  ;;  %v1914_v10 = vmax.f32 %v1024_v3, 0.0  ;;  %v371_v6 = vpack.c.bf16 %v200_v63, %v199_v61  ;;  %v211_v63 = vld [vmem:[%s5112_s0 + $0x5a0] sm:$0xff] }
 0x138   :  { %v1917_v9 = vmax.f32 %v1035_v5, 0.0  ;;  %3391 = vmatmul.mubr.msk.bf16.gmra.mrb[152].mxu0 %vm424_vm1, %v364_v2 }
 0x139   :  { %v1915_v11 = vmax.f32 %v1027_v7, 0.0  ;;  %3394 = vmatprep.mubr.msk.bf16.mxu0 %vm424_vm1, %v365_v13 }
 0x13a   :  { %v4505_v14 = vpack.c.bf16 %v1917_v9, %v1916_v8 }
 0x13b   :  { %v4513_v19 = vpack.c.bf16 %v1915_v11, %v1914_v10  ;;  %v3288_v20 = vpop.f32.mrb[48].mxu0 }
 0x13c   :  { %v1048_v22 = vadd.f32 %v3288_v20, %v4238_v16  ;;  %v1039_v23 = vpop.f32.mrb[49].mxu0  ;;  %v204_v20 = vld [vmem:[%s5112_s0 + $0x568] sm:$0xff] }
 0x13d   :  { %v1040_v25 = vadd.f32 %v4238_v16, %v1039_v23  ;;  %v3289_v26 = vpop.f32.mrb[50].mxu0 }
 0x13e   :  { %v1051_v34 = vadd.f32 %v3289_v26, %v4238_v16  ;;  %v1042_v27 = vpop.f32.mrb[51].mxu0  ;;  %v1920_v29 = vmax.f32 %v1048_v22, 0.0  ;;  %v372_v26 = vpack.c.bf16 %v202_v40, %v201_v38  ;;  %v213_v40 = vld [vmem:[%s5112_s0 + $0x5b0] sm:$0xff] }
 0x13f   :  { %v1043_v28 = vadd.f32 %v4238_v16, %v1042_v27  ;;  %v1918_v31 = vmax.f32 %v1040_v25, 0.0  ;;  %v373_v27 = vpack.c.bf16 %v204_v20, %v203_v18  ;;  %v215_v20 = vld [vmem:[%s5112_s0 + $0x5c0] sm:$0xff] }
 0x140   :  { %v1921_v30 = vmax.f32 %v1051_v34, 0.0  ;;  %3395 = vmatmul.mubr.msk.bf16.gmra.mrb[156].mxu0 %vm424_vm1, %v366_v24 }
 0x141   :  { %v1919_v32 = vmax.f32 %v1043_v28, 0.0  ;;  %3398 = vmatprep.mubr.msk.bf16.mxu0 %vm424_vm1, %v367_v37 }
 0x142   :  { %v2183_v60 = vpack.c.bf16 %v1921_v30, %v1920_v29 }
 0x143   :  { %v2182_v43 = vpack.c.bf16 %v1919_v32, %v1918_v31  ;;  %v3292_v44 = vpop.f32.mrb[52].mxu0 }
 0x144   :  { %v1064_v45 = vadd.f32 %v3292_v44, %v4238_v16  ;;  %v1055_v46 = vpop.f32.mrb[53].mxu0 }
 0x145   :  { %v1056_v48 = vadd.f32 %v4238_v16, %v1055_v46  ;;  %v3293_v57 = vpop.f32.mrb[54].mxu0  ;;  %3074 = vmatprep.subr.bf16.mxu1 %v2182_v43 }
 0x146   :  { %v1067_v50 = vadd.f32 %v3293_v57, %v4238_v16  ;;  %v1058_v51 = vpop.f32.mrb[55].mxu0  ;;  %3075 = vmatpush3.bf16.msra.mxu1 %v4447_v21  ;;  %v1924_v53 = vmax.f32 %v1064_v45, 0.0 }
 0x147   :  { %v1059_v52 = vadd.f32 %v4238_v16, %v1058_v51  ;;  %3076 = vmatprep.subr.bf16.mxu1 %v2183_v60  ;;  %v1922_v55 = vmax.f32 %v1056_v48, 0.0  ;;  %v206_v60 = vld [vmem:[%s5112_s0 + $0x578] sm:$0xff]  ;;  %v2128_v51 = vld [vmem:[%s5113_s1 + $0x10] sm:$0xff] }
 0x148   :  { %v1925_v54 = vmax.f32 %v1067_v50, 0.0  ;;  %3399 = vmatmul.mubr.msk.bf16.gmra.mrb[160].mxu0 %vm424_vm1, %v368_v47  ;;  %v374_v47 = vpack.c.bf16 %v206_v60, %v205_v35  ;;  %v217_v60 = vld [vmem:[%s5112_s0 + $0x5d0] sm:$0xff] }
 0x149   :  { %v1923_v56 = vmax.f32 %v1059_v52, 0.0  ;;  %3402 = vmatprep.mubr.msk.bf16.mxu0 %vm424_vm1, %v369_v49  ;;  %v375_v49 = vpack.c.bf16 %v208_v41, %v207_v39 }
 0x14a   :  { %v2185_v21 = vpack.c.bf16 %v1925_v54, %v1924_v53  ;;  %3077 = vmatpush3.bf16.msra.mxu1 %v4438_v15  ;;  %v2131_v53 = vld [vmem:[%s5113_s1 + $0x28] sm:$0xff] }
 0x14b   :  { %v2184_v0 = vpack.c.bf16 %v1923_v56, %v1922_v55  ;;  %v3296_v1 = vpop.f32.mrb[56].mxu0 }
 0x14c   :  { %v1080_v2 = vadd.f32 %v3296_v1, %v4238_v16  ;;  %v1071_v3 = vpop.f32.mrb[57].mxu0  ;;  %v2147_v1 = vpack.c.bf16 %v2131_v53, %v2131_v53 }
 0x14d   :  { %v1072_v13 = vadd.f32 %v4238_v16, %v1071_v3  ;;  %v3297_v5 = vpop.f32.mrb[58].mxu0  ;;  %3078 = vmatprep.subr.bf16.mxu1 %v2184_v0  ;;  %v212_v0 = vld [vmem:[%s5112_s0 + $0x5a8] sm:$0xff] }
 0x14e   :  { %v1083_v15 = vadd.f32 %v3297_v5, %v4238_v16  ;;  %v1074_v7 = vpop.f32.mrb[59].mxu0  ;;  %3079 = vmatpush3.bf16.msra.mxu1 %v4469_v42  ;;  %v1928_v9 = vmax.f32 %v1080_v2, 0.0 }
 0x14f   :  { %v1075_v8 = vadd.f32 %v4238_v16, %v1074_v7  ;;  %3080 = vmatprep.subr.bf16.mxu1 %v2185_v21  ;;  %v1926_v11 = vmax.f32 %v1072_v13, 0.0  ;;  %v2144_v21 = vpack.c.bf16 %v2128_v51, %v2128_v51 }
 0x150   :  { %v1929_v10 = vmax.f32 %v1083_v15, 0.0  ;;  %3403 = vmatmul.mubr.msk.bf16.gmra.mrb[164].mxu0 %vm424_vm1, %v370_v4 }
 0x151   :  { %v1927_v12 = vmax.f32 %v1075_v8, 0.0  ;;  %3406 = vmatprep.mubr.msk.bf16.mxu0 %vm424_vm1, %v371_v6 }
 0x152   :  { %v2187_v42 = vpack.c.bf16 %v1929_v10, %v1928_v9  ;;  %3081 = vmatpush3.bf16.msra.mxu1 %v4461_v36 }
 0x153   :  { %v2186_v22 = vpack.c.bf16 %v1927_v12, %v1926_v11  ;;  %v3300_v23 = vpop.f32.mrb[60].mxu0 }
 0x154   :  { %v1096_v24 = vadd.f32 %v3300_v23, %v4238_v16  ;;  %v1087_v25 = vpop.f32.mrb[61].mxu0 }
 0x155   :  { %v1088_v37 = vadd.f32 %v4238_v16, %v1087_v25  ;;  %v3301_v34 = vpop.f32.mrb[62].mxu0  ;;  %3082 = vmatprep.subr.bf16.mxu1 %v2186_v22  ;;  %v216_v22 = vld [vmem:[%s5112_s0 + $0x5c8] sm:$0xff] }
 0x156   :  { %v1099_v36 = vadd.f32 %v3301_v34, %v4238_v16  ;;  %v1090_v28 = vpop.f32.mrb[63].mxu0  ;;  %3083 = vmatpush3.bf16.msra.mxu1 %v4491_v62  ;;  %v1932_v30 = vmax.f32 %v1096_v24, 0.0 }
 0x157   :  { %v1091_v29 = vadd.f32 %v4238_v16, %v1090_v28  ;;  %3084 = vmatprep.subr.bf16.mxu1 %v2187_v42  ;;  %v1930_v32 = vmax.f32 %v1088_v37, 0.0  ;;  %v214_v42 = vld [vmem:[%s5112_s0 + $0x5b8] sm:$0xff] }
 0x158   :  { %v1933_v31 = vmax.f32 %v1099_v36, 0.0  ;;  %3407 = vmatmul.mubr.msk.bf16.gmra.mrb[168].mxu0 %vm424_vm1, %v372_v26  ;;  %v378_v37 = vpack.c.bf16 %v214_v42, %v213_v40  ;;  %v379_v36 = vpack.c.bf16 %v216_v22, %v215_v20 }
 0x159   :  { %v1931_v33 = vmax.f32 %v1091_v29, 0.0  ;;  %3410 = vmatprep.mubr.msk.bf16.mxu0 %vm424_vm1, %v373_v27 }
 0x15a   :  { %v2189_v62 = vpack.c.bf16 %v1933_v31, %v1932_v30  ;;  %3085 = vmatpush3.bf16.msra.mxu1 %v4483_v58 }
 0x15b   :  { %v2188_v43 = vpack.c.bf16 %v1931_v33, %v1930_v32  ;;  %v3304_v44 = vpop.f32.mrb[64].mxu0 }
 0x15c   :  { %v1112_v45 = vadd.f32 %v3304_v44, %v4238_v16  ;;  %v1103_v46 = vpop.f32.mrb[65].mxu0 }
 0x15d   :  { %v1104_v48 = vadd.f32 %v4238_v16, %v1103_v46  ;;  %v3305_v57 = vpop.f32.mrb[66].mxu0  ;;  %3086 = vmatprep.subr.bf16.mxu1 %v2188_v43 }
 0x15e   :  { %v1115_v58 = vadd.f32 %v3305_v57, %v4238_v16  ;;  %v1106_v50 = vpop.f32.mrb[67].mxu0  ;;  %3087 = vmatpush3.bf16.msra.mxu1 %v4513_v19  ;;  %v1936_v54 = vmax.f32 %v1112_v45, 0.0  ;;  %v209_v19 = vld [vmem:[%s5112_s0 + $0x590] sm:$0xff] }
 0x15f   :  { %v1107_v52 = vadd.f32 %v4238_v16, %v1106_v50  ;;  %3088 = vmatprep.subr.bf16.mxu1 %v2189_v62  ;;  %v1934_v56 = vmax.f32 %v1104_v48, 0.0  ;;  %v376_v5 = vpack.c.bf16 %v210_v59, %v209_v19  ;;  %v218_v62 = vld [vmem:[%s5112_s0 + $0x5d8] sm:$0xff] }
 0x160   :  { %v1937_v55 = vmax.f32 %v1115_v58, 0.0  ;;  %3411 = vmatmul.mubr.msk.bf16.gmra.mrb[172].mxu0 %vm424_vm1, %v374_v47  ;;  %v380_v46 = vpack.c.bf16 %v218_v62, %v217_v60 }
 0x161   :  { %v1935_v17 = vmax.f32 %v1107_v52, 0.0  ;;  %3414 = vmatprep.mubr.msk.bf16.mxu0 %vm424_vm1, %v375_v49 }
 0x162   :  { %v4612_v61 = vpack.c.bf16 %v1937_v55, %v1936_v54  ;;  %3089 = vmatpush3.bf16.msra.mxu1 %v4505_v14  ;;  %v377_v14 = vpack.c.bf16 %v212_v0, %v211_v63 }
 0x163   :  { %v4621_v2 = vpack.c.bf16 %v1935_v17, %v1934_v56  ;;  %v3308_v3 = vpop.f32.mrb[68].mxu0 }
 0x164   :  { %v1128_v4 = vadd.f32 %v3308_v3, %v4238_v16  ;;  %v1119_v13 = vpop.f32.mrb[69].mxu0 }
 0x165   :  { %v1120_v6 = vadd.f32 %v4238_v16, %v1119_v13  ;;  %v3309_v15 = vpop.f32.mrb[70].mxu0  ;;  %2359 = vmatmul.mubr.bf16.vlgmr.msra.gmra.mrb[72].mxu1 %v2144_v21 }
 0x166   :  { %v1131_v7 = vadd.f32 %v3309_v15, %v4238_v16  ;;  %v1122_v8 = vpop.f32.mrb[71].mxu0  ;;  %2398 = vmatprep.mubr.bf16.mxu1 %v2147_v1  ;;  %v1940_v10 = vmax.f32 %v1128_v4, 0.0 }
 0x167   :  { %v1123_v9 = vadd.f32 %v4238_v16, %v1122_v8  ;;  %v1938_v12 = vmax.f32 %v1120_v6, 0.0 }
 0x168   :  { %v1941_v11 = vmax.f32 %v1131_v7, 0.0  ;;  %3415 = vmatmul.mubr.msk.bf16.gmra.mrb[176].mxu0 %vm424_vm1, %v376_v5 }
 0x169   :  { %v1939_v38 = vmax.f32 %v1123_v9, 0.0  ;;  %3418 = vmatprep.mubr.msk.bf16.mxu0 %vm424_vm1, %v377_v14 }
 0x16a   :  { %v4635_v18 = vpack.c.bf16 %v1941_v11, %v1940_v10 }
 0x16b   :  { %v4643_v23 = vpack.c.bf16 %v1939_v38, %v1938_v12  ;;  %v3312_v24 = vpop.f32.mrb[72].mxu0 }
 0x16c   :  { %v1144_v25 = vadd.f32 %v3312_v24, %v4238_v16  ;;  %v1135_v26 = vpop.f32.mrb[73].mxu0 }
 0x16d   :  { %v1136_v34 = vadd.f32 %v4238_v16, %v1135_v26  ;;  %v3313_v27 = vpop.f32.mrb[74].mxu0 }
 0x16e   :  { %v1147_v28 = vadd.f32 %v3313_v27, %v4238_v16  ;;  %v1138_v29 = vpop.f32.mrb[75].mxu0  ;;  %v1944_v31 = vmax.f32 %v1144_v25, 0.0 }
 0x16f   :  { %v1139_v30 = vadd.f32 %v4238_v16, %v1138_v29  ;;  %v1942_v33 = vmax.f32 %v1136_v34, 0.0 }
 0x170   :  { %v1945_v32 = vmax.f32 %v1147_v28, 0.0  ;;  %3419 = vmatmul.mubr.msk.bf16.gmra.mrb[180].mxu0 %vm424_vm1, %v378_v37  ;;  %v4683_v37 = vld [vmem:[%s5115_s3] ss:$0 sm:$0xff] }
 0x171   :  { %v1943_v35 = vmax.f32 %v1139_v30, 0.0  ;;  %3422 = vmatprep.mubr.msk.bf16.mxu0 %vm424_vm1, %v379_v36 }
 0x172   :  { %v4657_v39 = vpack.c.bf16 %v1945_v32, %v1944_v31 }
 0x173   :  { %v4659_v41 = vpack.c.bf16 %v1943_v35, %v1942_v33  ;;  %v3316_v43 = vpop.f32.mrb[76].mxu0 }
 0x174   :  { %v1160_v44 = vadd.f32 %v3316_v43, %v4238_v16  ;;  %v1151_v45 = vpop.f32.mrb[77].mxu0 }
 0x175   :  { %v1152_v47 = vadd.f32 %v4238_v16, %v1151_v45  ;;  %v3317_v48 = vpop.f32.mrb[78].mxu0 }
 0x176   :  { %v1163_v57 = vadd.f32 %v3317_v48, %v4238_v16  ;;  %v1154_v49 = vpop.f32.mrb[79].mxu0  ;;  %v1948_v50 = vmax.f32 %v1160_v44, 0.0 }
 0x177   :  { %v1155_v58 = vadd.f32 %v4238_v16, %v1154_v49  ;;  %v1946_v52 = vmax.f32 %v1152_v47, 0.0 }
 0x178   :  { %v1949_v51 = vmax.f32 %v1163_v57, 0.0  ;;  %3423 = vmatmul.mubr.msk.bf16.gmra.mrb[184].mxu0 %vm424_vm1, %v380_v46 }
 0x179   :  { %v1947_v53 = vmax.f32 %v1155_v58, 0.0 }
 0x17a   :  { %v4666_v54 = vpack.c.bf16 %v1949_v51, %v1948_v50 }
 0x17b   :  { %v4668_v55 = vpack.c.bf16 %v1947_v53, %v1946_v52  ;;  %v3320_v56 = vpop.f32.mrb[80].mxu0 }
 0x17c   :  { %v1176_v17 = vadd.f32 %v3320_v56, %v4238_v16  ;;  %v1167_v19 = vpop.f32.mrb[81].mxu0 }
 0x17d   :  { %v1168_v59 = vadd.f32 %v4238_v16, %v1167_v19  ;;  %v3321_v21 = vpop.f32.mrb[82].mxu0 }
 0x17e   :  { %v1179_v63 = vadd.f32 %v3321_v21, %v4238_v16  ;;  %v1170_v0 = vpop.f32.mrb[83].mxu0  ;;  %v1952_v3 = vmax.f32 %v1176_v17, 0.0 }
 0x17f   :  { %v1171_v1 = vadd.f32 %v4238_v16, %v1170_v0  ;;  %v1950_v13 = vmax.f32 %v1168_v59, 0.0 }
 0x180   :  { %v1953_v4 = vmax.f32 %v1179_v63, 0.0 }
 0x181   :  { %v1951_v5 = vmax.f32 %v1171_v1, 0.0 }
 0x182   :  { %v2199_v6 = vpack.c.bf16 %v1953_v4, %v1952_v3 }
 0x183   :  { %v2198_v15 = vpack.c.bf16 %v1951_v5, %v1950_v13  ;;  %v3324_v14 = vpop.f32.mrb[84].mxu0 }
 0x184   :  { %v1192_v7 = vadd.f32 %v3324_v14, %v4238_v16  ;;  %v1183_v8 = vpop.f32.mrb[85].mxu0 }
 0x185   :  { %v1184_v9 = vadd.f32 %v4238_v16, %v1183_v8  ;;  %v3325_v10 = vpop.f32.mrb[86].mxu0  ;;  %3096 = vmatprep.subr.bf16.mxu1 %v2198_v15 }
 0x186   :  { %v1195_v11 = vadd.f32 %v3325_v10, %v4238_v16  ;;  %v1186_v12 = vpop.f32.mrb[87].mxu0  ;;  %3097 = vmatpush3.bf16.msra.mxu1 %v4621_v2  ;;  %v1956_v40 = vmax.f32 %v1192_v7, 0.0 }
 0x187   :  { %v1187_v38 = vadd.f32 %v4238_v16, %v1186_v12  ;;  %3098 = vmatprep.subr.bf16.mxu1 %v2199_v6  ;;  %v1954_v20 = vmax.f32 %v1184_v9, 0.0 }
 0x188   :  { %v1957_v42 = vmax.f32 %v1195_v11, 0.0 }
 0x189   :  { %v1955_v22 = vmax.f32 %v1187_v38, 0.0 }
 0x18a   :  { %v2201_v24 = vpack.c.bf16 %v1957_v42, %v1956_v40  ;;  %3099 = vmatpush3.bf16.msra.mxu1 %v4612_v61  ;;  %v3428_v61 = vpop.f32.mrb[0].mxu1 }
 0x18b   :  { %v2200_v25 = vpack.c.bf16 %v1955_v22, %v1954_v20  ;;  %v3328_v26 = vpop.f32.mrb[88].mxu0  ;;  %v1599_v30 = vpop.f32.mrb[1].mxu1  ;;  %v1608_v44 = vadd.f32 %v4683_v37, %v3428_v61 }
 0x18c   :  { %v1208_v34 = vadd.f32 %v4683_v37, %v3328_v26  ;;  %v1199_v2 = vpop.f32.mrb[89].mxu0  ;;  %v3429_v33 = vpop.f32.mrb[2].mxu1  ;;  %v1600_v45 = vadd.f32 %v4683_v37, %v1599_v30  ;;  %v2130_v26 = vld [vmem:[%s5113_s1 + $0x20] sm:$0xff] }
 0x18d   :  { %v1200_v16 = vadd.f32 %v4683_v37, %v1199_v2  ;;  %v3329_v27 = vpop.f32.mrb[90].mxu0  ;;  %3100 = vmatprep.subr.bf16.mxu1 %v2200_v25  ;;  %v1602_v62 = vpop.f32.mrb[3].mxu1  ;;  %v2060_v58 = vmax.f32 %v1608_v44, 0.0 }
 0x18e   :  { %v1211_v36 = vadd.f32 %v4683_v37, %v3329_v27  ;;  %v1202_v28 = vpop.f32.mrb[91].mxu0  ;;  %3101 = vmatpush3.bf16.msra.mxu1 %v4643_v23  ;;  %v1960_v31 = vmax.f32 %v1208_v34, 0.0  ;;  %v1611_v23 = vadd.f32 %v4683_v37, %v3429_v33  ;;  %v1603_v48 = vadd.f32 %v4683_v37, %v1602_v62  ;;  %v3432_v59 = vpop.f32.mrb[4].mxu1  ;;  %v2133_v34 = vld [vmem:[%s5113_s1 + $0x38] sm:$0xff] }
 0x18f   :  { %v1203_v29 = vadd.f32 %v4683_v37, %v1202_v28  ;;  %3102 = vmatprep.subr.bf16.mxu1 %v2201_v24  ;;  %v1958_v35 = vmax.f32 %v1200_v16, 0.0  ;;  %v2058_v50 = vmax.f32 %v1600_v45, 0.0  ;;  %v1615_v0 = vpop.f32.mrb[5].mxu1  ;;  %v2149_v33 = vpack.c.bf16 %v2133_v34, %v2133_v34 }
 0x190   :  { %v1961_v32 = vmax.f32 %v1211_v36, 0.0  ;;  %v2061_v51 = vmax.f32 %v1611_v23, 0.0  ;;  %v3433_v4 = vpop.f32.mrb[6].mxu1  ;;  %v1616_v14 = vadd.f32 %v4683_v37, %v1615_v0 }
 0x191   :  { %v1959_v60 = vmax.f32 %v1203_v29, 0.0  ;;  %v1618_v6 = vpop.f32.mrb[7].mxu1  ;;  %v1627_v7 = vadd.f32 %v4683_v37, %v3433_v4 }
 0x192   :  { %v2203_v43 = vpack.c.bf16 %v1961_v32, %v1960_v31  ;;  %3103 = vmatpush3.bf16.msra.mxu1 %v4635_v18  ;;  %v2059_v18 = vmax.f32 %v1603_v48, 0.0  ;;  %v4699_v19 = vpack.c.bf16 %v2061_v51, %v2060_v58  ;;  %v1619_v10 = vadd.f32 %v4683_v37, %v1618_v6  ;;  %v3436_v16 = vpop.f32.mrb[8].mxu1 }
 0x193   :  { %v2202_v46 = vpack.c.bf16 %v1959_v60, %v1958_v35  ;;  %v3332_v47 = vpop.f32.mrb[92].mxu0  ;;  %v2062_v40 = vmax.f32 %v1616_v14, 0.0  ;;  %v2065_v42 = vmax.f32 %v1627_v7, 0.0  ;;  %v1631_v28 = vpop.f32.mrb[9].mxu1  ;;  %v2146_v32 = vpack.c.bf16 %v2130_v26, %v2130_v26 }
 0x194   :  { %v1224_v57 = vadd.f32 %v4683_v37, %v3332_v47  ;;  %v1215_v49 = vpop.f32.mrb[93].mxu0  ;;  %v4702_v63 = vpack.c.bf16 %v2059_v18, %v2058_v50  ;;  %v1640_v62 = vadd.f32 %v4683_v37, %v3436_v16 }
 0x195   :  { %v1216_v52 = vadd.f32 %v4683_v37, %v1215_v49  ;;  %v3333_v53 = vpop.f32.mrb[94].mxu0  ;;  %3104 = vmatprep.subr.bf16.mxu1 %v2202_v46 }
 0x196   :  { %v1227_v56 = vadd.f32 %v4683_v37, %v3333_v53  ;;  %v1218_v17 = vpop.f32.mrb[95].mxu0  ;;  %3105 = vmatpush3.bf16.msra.mxu1 %v4659_v41  ;;  %v1964_v1 = vmax.f32 %v1224_v57, 0.0  ;;  %v1624_v41 = vadd.f32 %v4683_v37, %v3432_v59  ;;  %v2068_v57 = vmax.f32 %v1640_v62, 0.0 }
 0x197   :  { %v1219_v21 = vadd.f32 %v4683_v37, %v1218_v17  ;;  %3106 = vmatprep.subr.bf16.mxu1 %v2203_v43  ;;  %v1962_v13 = vmax.f32 %v1216_v52, 0.0  ;;  %v1632_v43 = vadd.f32 %v4683_v37, %v1631_v28 }
 0x198   :  { %v1965_v3 = vmax.f32 %v1227_v56, 0.0  ;;  %v2064_v38 = vmax.f32 %v1624_v41, 0.0 }
 0x199   :  { %v1963_v5 = vmax.f32 %v1219_v21, 0.0  ;;  %v2066_v49 = vmax.f32 %v1632_v43, 0.0 }
 0x19a   :  { %v2205_v15 = vpack.c.bf16 %v1965_v3, %v1964_v1  ;;  %3107 = vmatpush3.bf16.msra.mxu1 %v4657_v39  ;;  %v2063_v39 = vmax.f32 %v1619_v10, 0.0  ;;  %v4719_v2 = vpack.c.bf16 %v2065_v42, %v2064_v38 }
 0x19b   :  { %v2204_v8 = vpack.c.bf16 %v1963_v5, %v1962_v13  ;;  %v3336_v9 = vpop.f32.mrb[96].mxu0 }
 0x19c   :  { %v1240_v11 = vadd.f32 %v4683_v37, %v3336_v9  ;;  %v1231_v12 = vpop.f32.mrb[97].mxu0  ;;  %v4722_v36 = vpack.c.bf16 %v2063_v39, %v2062_v40 }
 0x19d   :  { %v1232_v20 = vadd.f32 %v4683_v37, %v1231_v12  ;;  %v3337_v22 = vpop.f32.mrb[98].mxu0  ;;  %3108 = vmatprep.subr.bf16.mxu1 %v2204_v8 }
 0x19e   :  { %v1243_v24 = vadd.f32 %v4683_v37, %v3337_v22  ;;  %v1234_v25 = vpop.f32.mrb[99].mxu0  ;;  %3109 = vmatpush3.bf16.msra.mxu1 %v4668_v55  ;;  %v1968_v61 = vmax.f32 %v1240_v11, 0.0  ;;  %v3437_v55 = vpop.f32.mrb[10].mxu1 }
 0x19f   :  { %v1235_v27 = vadd.f32 %v4683_v37, %v1234_v25  ;;  %3110 = vmatprep.subr.bf16.mxu1 %v2205_v15  ;;  %v1966_v30 = vmax.f32 %v1232_v20, 0.0  ;;  %v1634_v35 = vpop.f32.mrb[11].mxu1  ;;  %v1643_v44 = vadd.f32 %v4683_v37, %v3437_v55 }
 0x1a0   :  { %v1969_v29 = vmax.f32 %v1243_v24, 0.0  ;;  %v1635_v46 = vadd.f32 %v4683_v37, %v1634_v35  ;;  %v3440_v56 = vpop.f32.mrb[12].mxu1 }
 0x1a1   :  { %v1967_v31 = vmax.f32 %v1235_v27, 0.0  ;;  %v2069_v58 = vmax.f32 %v1643_v44, 0.0  ;;  %v1647_v21 = vpop.f32.mrb[13].mxu1  ;;  %v1656_v15 = vadd.f32 %v4683_v37, %v3440_v56 }
 0x1a2   :  { %v4724_v60 = vpack.c.bf16 %v1969_v29, %v1968_v61  ;;  %3111 = vmatpush3.bf16.msra.mxu1 %v4666_v54  ;;  %v2067_v51 = vmax.f32 %v1635_v46, 0.0  ;;  %v3441_v3 = vpop.f32.mrb[14].mxu1  ;;  %v1648_v41 = vadd.f32 %v4683_v37, %v1647_v21 }
 0x1a3   :  { %v4730_v45 = vpack.c.bf16 %v1967_v31, %v1966_v30  ;;  %v3340_v23 = vpop.f32.mrb[100].mxu0  ;;  %v4736_v18 = vpack.c.bf16 %v2069_v58, %v2068_v57  ;;  %v1650_v5 = vpop.f32.mrb[15].mxu1  ;;  %v1659_v14 = vadd.f32 %v4683_v37, %v3441_v3  ;;  %v2072_v12 = vmax.f32 %v1656_v15, 0.0 }
 0x1a4   :  { %v1256_v47 = vadd.f32 %v4683_v37, %v3340_v23  ;;  %v1247_v48 = vpop.f32.mrb[101].mxu0  ;;  %v4739_v59 = vpack.c.bf16 %v2067_v51, %v2066_v49  ;;  %v1651_v9 = vadd.f32 %v4683_v37, %v1650_v5  ;;  %v2070_v38 = vmax.f32 %v1648_v41, 0.0  ;;  %v3444_v26 = vpop.f32.mrb[16].mxu1 }
 0x1a5   :  { %v1248_v50 = vadd.f32 %v4683_v37, %v1247_v48  ;;  %v3341_v54 = vpop.f32.mrb[102].mxu0  ;;  %2399 = vmatmul.mubr.bf16.vlgmr.msra.gmra.mrb[76].mxu1 %v2146_v32  ;;  %v2073_v40 = vmax.f32 %v1659_v14, 0.0  ;;  %v1663_v27 = vpop.f32.mrb[17].mxu1 }
 0x1a6   :  { %v1259_v52 = vadd.f32 %v4683_v37, %v3341_v54  ;;  %v1250_v53 = vpop.f32.mrb[103].mxu0  ;;  %2438 = vmatprep.mubr.bf16.mxu1 %v2149_v33  ;;  %v1972_v0 = vmax.f32 %v1256_v47, 0.0  ;;  %v2071_v22 = vmax.f32 %v1651_v9, 0.0  ;;  %v3445_v29 = vpop.f32.mrb[18].mxu1  ;;  %v1672_v33 = vadd.f32 %v4683_v37, %v3444_v26 }
 0x1a7   :  { %v1251_v17 = vadd.f32 %v4683_v37, %v1250_v53  ;;  %v1970_v4 = vmax.f32 %v1248_v50, 0.0  ;;  %v4752_v25 = vpack.c.bf16 %v2073_v40, %v2072_v12  ;;  %v1666_v31 = vpop.f32.mrb[19].mxu1  ;;  %v1664_v35 = vadd.f32 %v4683_v37, %v1663_v27 }
 0x1a8   :  { %v1973_v1 = vmax.f32 %v1259_v52, 0.0  ;;  %v4755_v16 = vpack.c.bf16 %v2071_v22, %v2070_v38  ;;  %v1675_v62 = vadd.f32 %v4683_v37, %v3445_v29  ;;  %v1667_v23 = vadd.f32 %v4683_v37, %v1666_v31  ;;  %v3448_v56 = vpop.f32.mrb[20].mxu1 }
 0x1a9   :  { %v1971_v13 = vmax.f32 %v1251_v17, 0.0  ;;  %v2076_v48 = vmax.f32 %v1672_v33, 0.0  ;;  %v2074_v57 = vmax.f32 %v1664_v35, 0.0  ;;  %v1688_v14 = vadd.f32 %v4683_v37, %v3448_v56 }
 0x1aa   :  { %v4741_v6 = vpack.c.bf16 %v1973_v1, %v1972_v0  ;;  %v2077_v49 = vmax.f32 %v1675_v62, 0.0  ;;  %v2075_v54 = vmax.f32 %v1667_v23, 0.0  ;;  %v1679_v0 = vpop.f32.mrb[21].mxu1 }
 0x1ab   :  { %v4746_v7 = vpack.c.bf16 %v1971_v13, %v1970_v4  ;;  %v3344_v8 = vpop.f32.mrb[104].mxu0  ;;  %v3449_v4 = vpop.f32.mrb[22].mxu1 }
 0x1ac   :  { %v1272_v10 = vadd.f32 %v4683_v37, %v3344_v8  ;;  %v1263_v11 = vpop.f32.mrb[105].mxu0  ;;  %v4768_v53 = vpack.c.bf16 %v2077_v49, %v2076_v48  ;;  %v4771_v21 = vpack.c.bf16 %v2075_v54, %v2074_v57  ;;  %v1682_v15 = vpop.f32.mrb[23].mxu1  ;;  %v1680_v8 = vadd.f32 %v4683_v37, %v1679_v0 }
 0x1ad   :  { %v1264_v42 = vadd.f32 %v4683_v37, %v1263_v11  ;;  %v3345_v20 = vpop.f32.mrb[106].mxu0  ;;  %v1691_v9 = vadd.f32 %v4683_v37, %v3449_v4  ;;  %v1683_v12 = vadd.f32 %v4683_v37, %v1682_v15 }
 0x1ae   :  { %v1275_v39 = vadd.f32 %v4683_v37, %v3345_v20  ;;  %v1266_v24 = vpop.f32.mrb[107].mxu0  ;;  %v1976_v28 = vmax.f32 %v1272_v10, 0.0  ;;  %v2078_v20 = vmax.f32 %v1680_v8, 0.0 }
 0x1af   :  { %v1267_v34 = vadd.f32 %v4683_v37, %v1266_v24  ;;  %v1974_v55 = vmax.f32 %v1264_v42, 0.0  ;;  %v2080_v42 = vmax.f32 %v1688_v14, 0.0  ;;  %v2081_v22 = vmax.f32 %v1691_v9, 0.0 }
 0x1b0   :  { %v1977_v61 = vmax.f32 %v1275_v39, 0.0  ;;  %v2079_v26 = vmax.f32 %v1683_v12, 0.0 }
 0x1b1   :  { %v1975_v30 = vmax.f32 %v1267_v34, 0.0 }
 0x1b2   :  { %v4757_v32 = vpack.c.bf16 %v1977_v61, %v1976_v28  ;;  %v4784_v28 = vpack.c.bf16 %v2081_v22, %v2080_v42  ;;  %v3452_v61 = vpop.f32.mrb[24].mxu1 }
 0x1b3   :  { %v4762_v43 = vpack.c.bf16 %v1975_v30, %v1974_v55  ;;  %v3348_v44 = vpop.f32.mrb[108].mxu0  ;;  %v4787_v55 = vpack.c.bf16 %v2079_v26, %v2078_v20  ;;  %v1695_v30 = vpop.f32.mrb[25].mxu1 }
 0x1b4   :  { %v1288_v46 = vadd.f32 %v4683_v37, %v3348_v44  ;;  %v1279_v47 = vpop.f32.mrb[109].mxu0  ;;  %v3453_v35 = vpop.f32.mrb[26].mxu1  ;;  %v1696_v48 = vadd.f32 %v4683_v37, %v1695_v30 }
 0x1b5   :  { %v1280_v58 = vadd.f32 %v4683_v37, %v1279_v47  ;;  %v3349_v50 = vpop.f32.mrb[110].mxu0  ;;  %v1698_v23 = vpop.f32.mrb[27].mxu1  ;;  %v1704_v47 = vadd.f32 %v4683_v37, %v3452_v61  ;;  %v1707_v57 = vadd.f32 %v4683_v37, %v3453_v35 }
 0x1b6   :  { %v1291_v51 = vadd.f32 %v4683_v37, %v3349_v50  ;;  %v1282_v52 = vpop.f32.mrb[111].mxu0  ;;  %v1980_v1 = vmax.f32 %v1288_v46, 0.0  ;;  %v1699_v50 = vadd.f32 %v4683_v37, %v1698_v23  ;;  %v2082_v56 = vmax.f32 %v1696_v48, 0.0  ;;  %v3456_v15 = vpop.f32.mrb[28].mxu1 }
 0x1b7   :  { %v1283_v17 = vadd.f32 %v4683_v37, %v1282_v52  ;;  %v1978_v13 = vmax.f32 %v1280_v58, 0.0  ;;  %v2084_v52 = vmax.f32 %v1704_v47, 0.0  ;;  %v1711_v9 = vpop.f32.mrb[29].mxu1 }
 0x1b8   :  { %v1981_v3 = vmax.f32 %v1291_v51, 0.0 }
 0x1b9   :  { %v1979_v5 = vmax.f32 %v1283_v17, 0.0  ;;  %v2085_v17 = vmax.f32 %v1707_v57, 0.0 }
 0x1ba   :  { %v4773_v41 = vpack.c.bf16 %v1981_v3, %v1980_v1  ;;  %v2083_v3 = vmax.f32 %v1699_v50, 0.0 }
 0x1bb   :  { %v4778_v10 = vpack.c.bf16 %v1979_v5, %v1978_v13  ;;  %v3352_v11 = vpop.f32.mrb[112].mxu0  ;;  %v4797_v5 = vpack.c.bf16 %v2085_v17, %v2084_v52 }
 0x1bc   :  { %v1304_v38 = vadd.f32 %v4683_v37, %v3352_v11  ;;  %v1295_v40 = vpop.f32.mrb[113].mxu0  ;;  %v4800_v8 = vpack.c.bf16 %v2083_v3, %v2082_v56 }
 0x1bd   :  { %v1296_v39 = vadd.f32 %v4683_v37, %v1295_v40  ;;  %v3353_v24 = vpop.f32.mrb[114].mxu0 }
 0x1be   :  { %v1307_v34 = vadd.f32 %v4683_v37, %v3353_v24  ;;  %v1298_v27 = vpop.f32.mrb[115].mxu0  ;;  %v1984_v31 = vmax.f32 %v1304_v38, 0.0  ;;  %v3457_v38 = vpop.f32.mrb[30].mxu1 }
 0x1bf   :  { %v1299_v29 = vadd.f32 %v4683_v37, %v1298_v27  ;;  %v1982_v62 = vmax.f32 %v1296_v39, 0.0  ;;  %v1714_v20 = vpop.f32.mrb[31].mxu1  ;;  %v1712_v39 = vadd.f32 %v4683_v37, %v1711_v9  ;;  %v1723_v24 = vadd.f32 %v4683_v37, %v3457_v38 }
 0x1c0   :  { %v1985_v33 = vmax.f32 %v1307_v34, 0.0  ;;  %v1715_v27 = vadd.f32 %v4683_v37, %v1714_v20  ;;  %v3460_v47 = vpop.f32.mrb[32].mxu1 }
 0x1c1   :  { %v1983_v44 = vmax.f32 %v1299_v29, 0.0 }
 0x1c2   :  { %v2215_v46 = vpack.c.bf16 %v1985_v33, %v1984_v31  ;;  %v2086_v31 = vmax.f32 %v1712_v39, 0.0  ;;  %v2089_v33 = vmax.f32 %v1723_v24, 0.0 }
 0x1c3   :  { %v2214_v49 = vpack.c.bf16 %v1983_v44, %v1982_v62  ;;  %v3356_v58 = vpop.f32.mrb[116].mxu0 }
 0x1c4   :  { %v1320_v54 = vadd.f32 %v4683_v37, %v3356_v58  ;;  %v1311_v51 = vpop.f32.mrb[117].mxu0 }
 0x1c5   :  { %v1312_v0 = vadd.f32 %v4683_v37, %v1311_v51  ;;  %v3357_v1 = vpop.f32.mrb[118].mxu0  ;;  %3118 = vmatprep.subr.bf16.mxu1 %v2214_v49  ;;  %v1727_v49 = vpop.f32.mrb[33].mxu1 }
 0x1c6   :  { %v1323_v4 = vadd.f32 %v4683_v37, %v3357_v1  ;;  %v1314_v13 = vpop.f32.mrb[119].mxu0  ;;  %3119 = vmatpush3.bf16.msra.mxu1 %v4730_v45  ;;  %v1988_v11 = vmax.f32 %v1320_v54, 0.0  ;;  %v1720_v45 = vadd.f32 %v4683_v37, %v3456_v15  ;;  %v3461_v54 = vpop.f32.mrb[34].mxu1 }
 0x1c7   :  { %v1315_v14 = vadd.f32 %v4683_v37, %v1314_v13  ;;  %3120 = vmatprep.subr.bf16.mxu1 %v2215_v46  ;;  %v1986_v40 = vmax.f32 %v1312_v0, 0.0  ;;  %v1730_v56 = vpop.f32.mrb[35].mxu1  ;;  %v1728_v0 = vadd.f32 %v4683_v37, %v1727_v49  ;;  %v1739_v1 = vadd.f32 %v4683_v37, %v3461_v54 }
 0x1c8   :  { %v1989_v12 = vmax.f32 %v1323_v4, 0.0  ;;  %v2088_v30 = vmax.f32 %v1720_v45, 0.0  ;;  %v1731_v13 = vadd.f32 %v4683_v37, %v1730_v56 }
 0x1c9   :  { %v1987_v42 = vmax.f32 %v1315_v14, 0.0 }
 0x1ca   :  { %v2217_v22 = vpack.c.bf16 %v1989_v12, %v1988_v11  ;;  %3121 = vmatpush3.bf16.msra.mxu1 %v4724_v60  ;;  %v2087_v60 = vmax.f32 %v1715_v27, 0.0  ;;  %v4811_v46 = vpack.c.bf16 %v2089_v33, %v2088_v30  ;;  %v2090_v11 = vmax.f32 %v1728_v0, 0.0 }
 0x1cb   :  { %v2216_v26 = vpack.c.bf16 %v1987_v42, %v1986_v40  ;;  %v3360_v34 = vpop.f32.mrb[120].mxu0  ;;  %v2093_v12 = vmax.f32 %v1739_v1, 0.0  ;;  %v3464_v42 = vpop.f32.mrb[36].mxu1 }
 0x1cc   :  { %v1336_v61 = vadd.f32 %v4683_v37, %v3360_v34  ;;  %v1327_v29 = vpop.f32.mrb[121].mxu0  ;;  %v4814_v57 = vpack.c.bf16 %v2087_v60, %v2086_v31  ;;  %v1752_v39 = vadd.f32 %v4683_v37, %v3464_v42  ;;  %v1743_v24 = vpop.f32.mrb[37].mxu1 }
 0x1cd   :  { %v1328_v35 = vadd.f32 %v4683_v37, %v1327_v29  ;;  %v3361_v62 = vpop.f32.mrb[122].mxu0  ;;  %3122 = vmatprep.subr.bf16.mxu1 %v2216_v26  ;;  %v1744_v27 = vadd.f32 %v4683_v37, %v1743_v24 }
 0x1ce   :  { %v1339_v44 = vadd.f32 %v4683_v37, %v3361_v62  ;;  %v1330_v23 = vpop.f32.mrb[123].mxu0  ;;  %3123 = vmatpush3.bf16.msra.mxu1 %v4746_v7  ;;  %v1992_v58 = vmax.f32 %v1336_v61, 0.0  ;;  %v1736_v7 = vadd.f32 %v4683_v37, %v3460_v47  ;;  %v3465_v61 = vpop.f32.mrb[38].mxu1  ;;  %v2096_v31 = vmax.f32 %v1752_v39, 0.0 }
 0x1cf   :  { %v1331_v48 = vadd.f32 %v4683_v37, %v1330_v23  ;;  %3124 = vmatprep.subr.bf16.mxu1 %v2217_v22  ;;  %v1990_v51 = vmax.f32 %v1328_v35, 0.0  ;;  %v1755_v33 = vadd.f32 %v4683_v37, %v3465_v61  ;;  %v1746_v35 = vpop.f32.mrb[39].mxu1  ;;  %v2094_v60 = vmax.f32 %v1744_v27, 0.0 }
 0x1d0   :  { %v1993_v50 = vmax.f32 %v1339_v44, 0.0  ;;  %v2092_v9 = vmax.f32 %v1736_v7, 0.0  ;;  %v1747_v44 = vadd.f32 %v4683_v37, %v1746_v35 }
 0x1d1   :  { %v1991_v52 = vmax.f32 %v1331_v48, 0.0  ;;  %v2097_v47 = vmax.f32 %v1755_v33, 0.0 }
 0x1d2   :  { %v2219_v17 = vpack.c.bf16 %v1993_v50, %v1992_v58  ;;  %3125 = vmatpush3.bf16.msra.mxu1 %v4741_v6  ;;  %v2091_v6 = vmax.f32 %v1731_v13, 0.0  ;;  %v4825_v45 = vpack.c.bf16 %v2093_v12, %v2092_v9  ;;  %v2095_v58 = vmax.f32 %v1747_v44, 0.0  ;;  %v3468_v50 = vpop.f32.mrb[40].mxu1 }
 0x1d3   :  { %v2218_v3 = vpack.c.bf16 %v1991_v52, %v1990_v51  ;;  %v3364_v4 = vpop.f32.mrb[124].mxu0  ;;  %v2132_v52 = vld [vmem:[%s5113_s1 + $0x30] sm:$0xff]  ;;  %v4839_v56 = vpack.c.bf16 %v2097_v47, %v2096_v31 }
 0x1d4   :  { %v1352_v15 = vadd.f32 %v4683_v37, %v3364_v4  ;;  %v1343_v14 = vpop.f32.mrb[125].mxu0  ;;  %v4829_v34 = vpack.c.bf16 %v2091_v6, %v2090_v11  ;;  %v1759_v4 = vpop.f32.mrb[41].mxu1 }
 0x1d5   :  { %v1344_v38 = vadd.f32 %v4683_v37, %v1343_v14  ;;  %v3365_v40 = vpop.f32.mrb[126].mxu0  ;;  %3126 = vmatprep.subr.bf16.mxu1 %v2218_v3  ;;  %v2135_v14 = vld [vmem:[%s5113_s1 + $0x48] sm:$0xff]  ;;  %v1760_v9 = vadd.f32 %v4683_v37, %v1759_v4  ;;  %v3469_v11 = vpop.f32.mrb[42].mxu1 }
 0x1d6   :  { %v1355_v20 = vadd.f32 %v4683_v37, %v3365_v40  ;;  %v1346_v22 = vpop.f32.mrb[127].mxu0  ;;  %3127 = vmatpush3.bf16.msra.mxu1 %v4762_v43  ;;  %v1996_v29 = vmax.f32 %v1352_v15, 0.0  ;;  %v2148_v15 = vpack.c.bf16 %v2132_v52, %v2132_v52  ;;  %v1771_v6 = vadd.f32 %v4683_v37, %v3469_v11  ;;  %v1762_v42 = vpop.f32.mrb[43].mxu1 }
 0x1d7   :  { %v1347_v26 = vadd.f32 %v4683_v37, %v1346_v22  ;;  %3128 = vmatprep.subr.bf16.mxu1 %v2219_v17  ;;  %v1994_v43 = vmax.f32 %v1344_v38, 0.0  ;;  %v1768_v17 = vadd.f32 %v4683_v37, %v3468_v50  ;;  %v2098_v22 = vmax.f32 %v1760_v9, 0.0  ;;  %v3472_v44 = vpop.f32.mrb[44].mxu1 }
 0x1d8   :  { %v1997_v30 = vmax.f32 %v1355_v20, 0.0  ;;  %v1763_v39 = vadd.f32 %v4683_v37, %v1762_v42  ;;  %v2101_v27 = vmax.f32 %v1771_v6, 0.0  ;;  %v1784_v47 = vadd.f32 %v4683_v37, %v3472_v44 }
 0x1d9   :  { %v1995_v62 = vmax.f32 %v1347_v26, 0.0  ;;  %v2100_v40 = vmax.f32 %v1768_v17, 0.0  ;;  %v2151_v26 = vpack.c.bf16 %v2135_v14, %v2135_v14 }
 0x1da   :  { %v2221_v23 = vpack.c.bf16 %v1997_v30, %v1996_v29  ;;  %3129 = vmatpush3.bf16.msra.mxu1 %v4757_v32  ;;  %v4843_v32 = vpack.c.bf16 %v2095_v58, %v2094_v60  ;;  %v2099_v30 = vmax.f32 %v1763_v39, 0.0  ;;  %v2104_v52 = vmax.f32 %v1784_v47, 0.0 }
 0x1db   :  { %v2220_v48 = vpack.c.bf16 %v1995_v62, %v1994_v43  ;;  %v3368_v49 = vpop.f32.mrb[128].mxu0  ;;  %v4860_v35 = vpack.c.bf16 %v2101_v27, %v2100_v40 }
 0x1dc   :  { %v1368_v54 = vadd.f32 %v4683_v37, %v3368_v49  ;;  %v1359_v51 = vpop.f32.mrb[129].mxu0  ;;  %v4863_v60 = vpack.c.bf16 %v2099_v30, %v2098_v22 }
 0x1dd   :  { %v1360_v7 = vadd.f32 %v4683_v37, %v1359_v51  ;;  %v3369_v0 = vpop.f32.mrb[130].mxu0  ;;  %3130 = vmatprep.subr.bf16.mxu1 %v2220_v48  ;;  %v1775_v48 = vpop.f32.mrb[45].mxu1 }
 0x1de   :  { %v1371_v1 = vadd.f32 %v4683_v37, %v3369_v0  ;;  %v1362_v3 = vpop.f32.mrb[131].mxu0  ;;  %3131 = vmatpush3.bf16.msra.mxu1 %v4778_v10  ;;  %v2000_v12 = vmax.f32 %v1368_v54, 0.0  ;;  %v1776_v58 = vadd.f32 %v4683_v37, %v1775_v48  ;;  %v3473_v50 = vpop.f32.mrb[46].mxu1 }
 0x1df   :  { %v1363_v13 = vadd.f32 %v4683_v37, %v1362_v3  ;;  %3132 = vmatprep.subr.bf16.mxu1 %v2221_v23  ;;  %v1998_v20 = vmax.f32 %v1360_v7, 0.0  ;;  %v1787_v17 = vadd.f32 %v4683_v37, %v3473_v50  ;;  %v1778_v7 = vpop.f32.mrb[47].mxu1 }
 0x1e0   :  { %v2001_v38 = vmax.f32 %v1371_v1, 0.0  ;;  %v2102_v3 = vmax.f32 %v1776_v58, 0.0  ;;  %v1779_v4 = vadd.f32 %v4683_v37, %v1778_v7 }
 0x1e1   :  { %v1999_v10 = vmax.f32 %v1363_v13, 0.0 }
 0x1e2   :  { %v4854_v24 = vpack.c.bf16 %v2001_v38, %v2000_v12  ;;  %3133 = vmatpush3.bf16.msra.mxu1 %v4773_v41  ;;  %v2103_v11 = vmax.f32 %v1779_v4, 0.0  ;;  %v3476_v12 = vpop.f32.mrb[48].mxu1 }
 0x1e3   :  { %v4857_v61 = vpack.c.bf16 %v1999_v10, %v1998_v20  ;;  %v3372_v29 = vpop.f32.mrb[132].mxu0  ;;  %v1800_v42 = vadd.f32 %v4683_v37, %v3476_v12  ;;  %v1791_v27 = vpop.f32.mrb[49].mxu1 }
 0x1e4   :  { %v1384_v31 = vadd.f32 %v4683_v37, %v3372_v29  ;;  %v1375_v33 = vpop.f32.mrb[133].mxu0  ;;  %v4880_v22 = vpack.c.bf16 %v2103_v11, %v2102_v3  ;;  %v1792_v30 = vadd.f32 %v4683_v37, %v1791_v27 }
 0x1e5   :  { %v1376_v43 = vadd.f32 %v4683_v37, %v1375_v33  ;;  %v3373_v62 = vpop.f32.mrb[134].mxu0  ;;  %2439 = vmatmul.mubr.bf16.vlgmr.msra.gmra.mrb[80].mxu1 %v2148_v15  ;;  %v2105_v15 = vmax.f32 %v1787_v17, 0.0 }
 0x1e6   :  { %v1387_v41 = vadd.f32 %v4683_v37, %v3373_v62  ;;  %v1378_v23 = vpop.f32.mrb[135].mxu0  ;;  %2478 = vmatprep.mubr.bf16.mxu1 %v2151_v26  ;;  %v2004_v54 = vmax.f32 %v1384_v31, 0.0  ;;  %v3477_v31 = vpop.f32.mrb[50].mxu1  ;;  %v2108_v62 = vmax.f32 %v1800_v42, 0.0  ;;  %v2106_v48 = vmax.f32 %v1792_v30, 0.0 }
 0x1e7   :  { %v1379_v49 = vadd.f32 %v4683_v37, %v1378_v23  ;;  %v2002_v0 = vmax.f32 %v1376_v43, 0.0  ;;  %v4876_v6 = vpack.c.bf16 %v2105_v15, %v2104_v52  ;;  %v1803_v44 = vadd.f32 %v4683_v37, %v3477_v31 }
 0x1e8   :  { %v2005_v51 = vmax.f32 %v1387_v41, 0.0  ;;  %v1794_v41 = vpop.f32.mrb[51].mxu1 }
 0x1e9   :  { %v2003_v1 = vmax.f32 %v1379_v49, 0.0  ;;  %v1795_v49 = vadd.f32 %v4683_v37, %v1794_v41  ;;  %v2109_v50 = vmax.f32 %v1803_v44, 0.0  ;;  %v3480_v17 = vpop.f32.mrb[52].mxu1 }
 0x1ea   :  { %v4871_v13 = vpack.c.bf16 %v2005_v51, %v2004_v54  ;;  %v1816_v3 = vadd.f32 %v4683_v37, %v3480_v17 }
 0x1eb   :  { %v4873_v14 = vpack.c.bf16 %v2003_v1, %v2002_v0  ;;  %v3376_v9 = vpop.f32.mrb[136].mxu0  ;;  %v2107_v52 = vmax.f32 %v1795_v49, 0.0  ;;  %v4892_v1 = vpack.c.bf16 %v2109_v50, %v2108_v62 }
 0x1ec   :  { %v1400_v38 = vadd.f32 %v4683_v37, %v3376_v9  ;;  %v1391_v40 = vpop.f32.mrb[137].mxu0 }
 0x1ed   :  { %v1392_v20 = vadd.f32 %v4683_v37, %v1391_v40  ;;  %v3377_v10 = vpop.f32.mrb[138].mxu0  ;;  %v4896_v9 = vpack.c.bf16 %v2107_v52, %v2106_v48 }
 0x1ee   :  { %v1403_v39 = vadd.f32 %v4683_v37, %v3377_v10  ;;  %v1394_v26 = vpop.f32.mrb[139].mxu0  ;;  %v2008_v33 = vmax.f32 %v1400_v38, 0.0  ;;  %v1807_v38 = vpop.f32.mrb[53].mxu1 }
 0x1ef   :  { %v1395_v29 = vadd.f32 %v4683_v37, %v1394_v26  ;;  %v2006_v23 = vmax.f32 %v1392_v20, 0.0  ;;  %v1808_v42 = vadd.f32 %v4683_v37, %v1807_v38  ;;  %v3481_v20 = vpop.f32.mrb[54].mxu1  ;;  %v2112_v26 = vmax.f32 %v1816_v3, 0.0 }
 0x1f0   :  { %v2009_v43 = vmax.f32 %v1403_v39, 0.0  ;;  %v1819_v27 = vadd.f32 %v4683_v37, %v3481_v20 }
 0x1f1   :  { %v2007_v47 = vmax.f32 %v1395_v29, 0.0  ;;  %v1810_v29 = vpop.f32.mrb[55].mxu1 }
 0x1f2   :  { %v4887_v58 = vpack.c.bf16 %v2009_v43, %v2008_v33  ;;  %v2110_v33 = vmax.f32 %v1808_v42, 0.0  ;;  %v1811_v43 = vadd.f32 %v4683_v37, %v1810_v29  ;;  %v2113_v44 = vmax.f32 %v1819_v27, 0.0  ;;  %v3484_v48 = vpop.f32.mrb[56].mxu1 }
 0x1f3   :  { %v4889_v54 = vpack.c.bf16 %v2007_v47, %v2006_v23  ;;  %v3380_v51 = vpop.f32.mrb[140].mxu0  ;;  %v1832_v52 = vadd.f32 %v4683_v37, %v3484_v48 }
 0x1f4   :  { %v1416_v7 = vadd.f32 %v4683_v37, %v3380_v51  ;;  %v1407_v0 = vpop.f32.mrb[141].mxu0  ;;  %v2111_v47 = vmax.f32 %v1811_v43, 0.0  ;;  %v4908_v51 = vpack.c.bf16 %v2113_v44, %v2112_v26 }
 0x1f5   :  { %v1408_v4 = vadd.f32 %v4683_v37, %v1407_v0  ;;  %v3381_v15 = vpop.f32.mrb[142].mxu0  ;;  %v2116_v20 = vmax.f32 %v1832_v52, 0.0 }
 0x1f6   :  { %v1419_v11 = vadd.f32 %v4683_v37, %v3381_v15  ;;  %v1410_v12 = vpop.f32.mrb[143].mxu0  ;;  %v2012_v10 = vmax.f32 %v1416_v7, 0.0  ;;  %v4912_v0 = vpack.c.bf16 %v2111_v47, %v2110_v33  ;;  %v1823_v15 = vpop.f32.mrb[57].mxu1 }
 0x1f7   :  { %v1411_v40 = vadd.f32 %v4683_v37, %v1410_v12  ;;  %v2010_v30 = vmax.f32 %v1408_v4, 0.0  ;;  %v1824_v12 = vadd.f32 %v4683_v37, %v1823_v15  ;;  %v3485_v38 = vpop.f32.mrb[58].mxu1 }
 0x1f8   :  { %v2013_v39 = vmax.f32 %v1419_v11, 0.0 }
 0x1f9   :  { %v2011_v31 = vmax.f32 %v1411_v40, 0.0  ;;  %v2114_v29 = vmax.f32 %v1824_v12, 0.0 }
 0x1fa   :  { %v4903_v62 = vpack.c.bf16 %v2013_v39, %v2012_v10  ;;  %v1835_v10 = vadd.f32 %v4683_v37, %v3485_v38  ;;  %v1826_v39 = vpop.f32.mrb[59].mxu1 }
 0x1fb   :  { %v4905_v41 = vpack.c.bf16 %v2011_v31, %v2010_v30  ;;  %v3384_v23 = vpop.f32.mrb[144].mxu0  ;;  %v1827_v30 = vadd.f32 %v4683_v37, %v1826_v39 }
 0x1fc   :  { %v1432_v49 = vadd.f32 %v4683_v37, %v3384_v23  ;;  %v1423_v50 = vpop.f32.mrb[145].mxu0  ;;  %v2117_v33 = vmax.f32 %v1835_v10, 0.0 }
 0x1fd   :  { %v1424_v17 = vadd.f32 %v4683_v37, %v1423_v50  ;;  %v3385_v7 = vpop.f32.mrb[146].mxu0  ;;  %v2115_v23 = vmax.f32 %v1827_v30, 0.0 }
 0x1fe   :  { %v1435_v3 = vadd.f32 %v4683_v37, %v3385_v7  ;;  %v1426_v4 = vpop.f32.mrb[147].mxu0  ;;  %v2016_v40 = vmax.f32 %v1432_v49, 0.0  ;;  %v4920_v50 = vpack.c.bf16 %v2117_v33, %v2116_v20 }
 0x1ff   :  { %v1427_v11 = vadd.f32 %v4683_v37, %v1426_v4  ;;  %v2014_v26 = vmax.f32 %v1424_v17, 0.0  ;;  %v4923_v7 = vpack.c.bf16 %v2115_v23, %v2114_v29  ;;  %v3488_v17 = vpop.f32.mrb[60].mxu1 }
 0x200   :  { %v2017_v42 = vmax.f32 %v1435_v3, 0.0  ;;  %v1848_v15 = vadd.f32 %v4683_v37, %v3488_v17 }
 0x201   :  { %v2015_v27 = vmax.f32 %v1427_v11, 0.0  ;;  %v1839_v11 = vpop.f32.mrb[61].mxu1 }
 0x202   :  { %v2231_v31 = vpack.c.bf16 %v2017_v42, %v2016_v40  ;;  %v1840_v38 = vadd.f32 %v4683_v37, %v1839_v11  ;;  %v3489_v40 = vpop.f32.mrb[62].mxu1  ;;  %v2120_v10 = vmax.f32 %v1848_v15, 0.0 }
 0x203   :  { %v2230_v43 = vpack.c.bf16 %v2015_v27, %v2014_v26  ;;  %v3388_v44 = vpop.f32.mrb[148].mxu0  ;;  %v1851_v39 = vadd.f32 %v4683_v37, %v3489_v40  ;;  %v1842_v26 = vpop.f32.mrb[63].mxu1 }
 0x204   :  { %v1448_v47 = vadd.f32 %v4683_v37, %v3388_v44  ;;  %v1439_v48 = vpop.f32.mrb[149].mxu0  ;;  %v2118_v30 = vmax.f32 %v1840_v38, 0.0 }
 0x205   :  { %v1440_v49 = vadd.f32 %v4683_v37, %v1439_v48  ;;  %v3389_v52 = vpop.f32.mrb[150].mxu0  ;;  %3140 = vmatprep.subr.bf16.mxu1 %v2230_v43  ;;  %v2121_v43 = vmax.f32 %v1851_v39, 0.0  ;;  %v3492_v48 = vpop.f32.mrb[64].mxu1 }
 0x206   :  { %v1451_v3 = vadd.f32 %v4683_v37, %v3389_v52  ;;  %v1442_v4 = vpop.f32.mrb[151].mxu0  ;;  %3141 = vmatpush3.bf16.msra.mxu1 %v4857_v61  ;;  %v2020_v42 = vmax.f32 %v1448_v47, 0.0  ;;  %v1843_v61 = vadd.f32 %v4683_v37, %v1842_v26 }
 0x207   :  { %v1443_v12 = vadd.f32 %v4683_v37, %v1442_v4  ;;  %3142 = vmatprep.subr.bf16.mxu1 %v2231_v31  ;;  %v2018_v27 = vmax.f32 %v1440_v49, 0.0  ;;  %v4934_v17 = vpack.c.bf16 %v2121_v43, %v2120_v10 }
 0x208   :  { %v2021_v20 = vmax.f32 %v1451_v3, 0.0  ;;  %v2119_v23 = vmax.f32 %v1843_v61, 0.0  ;;  %v1864_v3 = vadd.f32 %v4683_v37, %v3492_v48 }
 0x209   :  { %v2019_v29 = vmax.f32 %v1443_v12, 0.0  ;;  %v1855_v12 = vpop.f32.mrb[65].mxu1 }
 0x20a   :  { %v2233_v33 = vpack.c.bf16 %v2021_v20, %v2020_v42  ;;  %3143 = vmatpush3.bf16.msra.mxu1 %v4854_v24  ;;  %v4938_v15 = vpack.c.bf16 %v2119_v23, %v2118_v30  ;;  %v1856_v40 = vadd.f32 %v4683_v37, %v1855_v12  ;;  %v3493_v42 = vpop.f32.mrb[66].mxu1  ;;  %v2124_v39 = vmax.f32 %v1864_v3, 0.0 }
 0x20b   :  { %v2232_v44 = vpack.c.bf16 %v2019_v29, %v2018_v27  ;;  %v3392_v31 = vpop.f32.mrb[152].mxu0  ;;  %v1867_v26 = vadd.f32 %v4683_v37, %v3493_v42  ;;  %v1858_v27 = vpop.f32.mrb[67].mxu1 }
 0x20c   :  { %v1464_v47 = vadd.f32 %v4683_v37, %v3392_v31  ;;  %v1455_v52 = vpop.f32.mrb[153].mxu0  ;;  %v2122_v61 = vmax.f32 %v1856_v40, 0.0 }
 0x20d   :  { %v1456_v49 = vadd.f32 %v4683_v37, %v1455_v52  ;;  %v3393_v4 = vpop.f32.mrb[154].mxu0  ;;  %3144 = vmatprep.subr.bf16.mxu1 %v2232_v44  ;;  %v2125_v31 = vmax.f32 %v1867_v26, 0.0 }
 0x20e   :  { %v1467_v24 = vadd.f32 %v4683_v37, %v3393_v4  ;;  %v1458_v11 = vpop.f32.mrb[155].mxu0  ;;  %3145 = vmatpush3.bf16.msra.mxu1 %v4873_v14  ;;  %v2024_v20 = vmax.f32 %v1464_v47, 0.0  ;;  %v4948_v14 = vld [vmem:[%s5115_s3] ss:$0 sm:$0xff] }
 0x20f   :  { %v1459_v38 = vadd.f32 %v4683_v37, %v1458_v11  ;;  %3146 = vmatprep.subr.bf16.mxu1 %v2233_v33  ;;  %v2022_v29 = vmax.f32 %v1456_v49, 0.0  ;;  %v1859_v43 = vadd.f32 %v4948_v14, %v1858_v27  ;;  %v3068_v33 = vpop.f32.mrb[68].mxu1 }
 0x210   :  { %v2025_v10 = vmax.f32 %v1467_v24, 0.0  ;;  %v3069_v23 = vpop.f32.mrb[69].mxu1  ;;  %v4955_v24 = vpack.c.bf16 %v2125_v31, %v2124_v39 }
 0x211   :  { %v2023_v30 = vmax.f32 %v1459_v38, 0.0  ;;  %v2123_v37 = vmax.f32 %v1859_v43, 0.0  ;;  %v4952_v52 = vadd.f32 %v3069_v23, %v3068_v33  ;;  %v3071_v3 = vpop.f32.mrb[70].mxu1 }
 0x212   :  { %v2235_v44 = vpack.c.bf16 %v2025_v10, %v2024_v20  ;;  %3147 = vmatpush3.bf16.msra.mxu1 %v4871_v13  ;;  %v3072_v11 = vpop.f32.mrb[71].mxu1 }
 0x213   :  { %v2234_v48 = vpack.c.bf16 %v2023_v30, %v2022_v29  ;;  %v3396_v47 = vpop.f32.mrb[156].mxu0  ;;  %v4958_v40 = vpack.c.bf16 %v2123_v37, %v2122_v61 }
 0x214   :  { %v1480_v49 = vadd.f32 %v4948_v14, %v3396_v47  ;;  %v1471_v4 = vpop.f32.mrb[157].mxu0  ;;  %v2137_v47 = vld [vmem:[%s5113_s1 + $0x58] sm:$0xff] }
 0x215   :  { %v1472_v12 = vadd.f32 %v4948_v14, %v1471_v4  ;;  %v3397_v38 = vpop.f32.mrb[158].mxu0  ;;  %3148 = vmatprep.subr.bf16.mxu1 %v2234_v48 }
 0x216   :  { %v1483_v13 = vadd.f32 %v4948_v14, %v3397_v38  ;;  %v1474_v42 = vpop.f32.mrb[159].mxu0  ;;  %3149 = vmatpush3.bf16.msra.mxu1 %v4889_v54  ;;  %v2028_v10 = vmax.f32 %v1480_v49, 0.0 }
 0x217   :  { %v1475_v20 = vadd.f32 %v4948_v14, %v1474_v42  ;;  %3150 = vmatprep.subr.bf16.mxu1 %v2235_v44  ;;  %v2026_v27 = vmax.f32 %v1472_v12, 0.0  ;;  %v2134_v44 = vld [vmem:[%s5113_s1 + $0x40] sm:$0xff] }
 0x218   :  { %v2029_v26 = vmax.f32 %v1483_v13, 0.0  ;;  %v2150_v11 = vpack.c.bf16 %v2134_v44, %v2134_v44 }
 0x219   :  { %v2027_v39 = vmax.f32 %v1475_v20, 0.0 }
 0x21a   :  { %v2237_v29 = vpack.c.bf16 %v2029_v26, %v2028_v10  ;;  %3151 = vmatpush3.bf16.msra.mxu1 %v4887_v58 }
 0x21b   :  { %v2236_v30 = vpack.c.bf16 %v2027_v39, %v2026_v27  ;;  %v3400_v43 = vpop.f32.mrb[160].mxu0 }
 0x21c   :  { %v1496_v61 = vadd.f32 %v4948_v14, %v3400_v43  ;;  %v1487_v33 = vpop.f32.mrb[161].mxu0 }
 0x21d   :  { %v1488_v31 = vadd.f32 %v4948_v14, %v1487_v33  ;;  %v3401_v23 = vpop.f32.mrb[162].mxu0  ;;  %3152 = vmatprep.subr.bf16.mxu1 %v2236_v30 }
 0x21e   :  { %v1499_v54 = vadd.f32 %v4948_v14, %v3401_v23  ;;  %v1490_v48 = vpop.f32.mrb[163].mxu0  ;;  %3153 = vmatpush3.bf16.msra.mxu1 %v4905_v41  ;;  %v2032_v37 = vmax.f32 %v1496_v61, 0.0  ;;  %v2153_v41 = vpack.c.bf16 %v2137_v47, %v2137_v47 }
 0x21f   :  { %v1491_v58 = vadd.f32 %v4948_v14, %v1490_v48  ;;  %3154 = vmatprep.subr.bf16.mxu1 %v2237_v29  ;;  %v2030_v49 = vmax.f32 %v1488_v31, 0.0 }
 0x220   :  { %v2033_v3 = vmax.f32 %v1499_v54, 0.0 }
 0x221   :  { %v2031_v4 = vmax.f32 %v1491_v58, 0.0 }
 0x222   :  { %v4975_v12 = vpack.c.bf16 %v2033_v3, %v2032_v37  ;;  %3155 = vmatpush3.bf16.msra.mxu1 %v4903_v62 }
 0x223   :  { %v4978_v38 = vpack.c.bf16 %v2031_v4, %v2030_v49  ;;  %v3404_v13 = vpop.f32.mrb[164].mxu0 }
 0x224   :  { %v1512_v42 = vadd.f32 %v4948_v14, %v3404_v13  ;;  %v1503_v20 = vpop.f32.mrb[165].mxu0 }
 0x225   :  { %v1504_v10 = vadd.f32 %v4948_v14, %v1503_v20  ;;  %v3405_v26 = vpop.f32.mrb[166].mxu0  ;;  %2479 = vmatmul.mubr.bf16.vlgmr.msra.gmra.mrb[84].mxu1 %v2150_v11 }
 0x226   :  { %v1515_v27 = vadd.f32 %v4948_v14, %v3405_v26  ;;  %v1506_v39 = vpop.f32.mrb[167].mxu0  ;;  %2518 = vmatprep.mubr.bf16.mxu1 %v2153_v41  ;;  %v2036_v30 = vmax.f32 %v1512_v42, 0.0 }
 0x227   :  { %v1507_v29 = vadd.f32 %v4948_v14, %v1506_v39  ;;  %v2034_v62 = vmax.f32 %v1504_v10, 0.0 }
 0x228   :  { %v2037_v43 = vmax.f32 %v1515_v27, 0.0 }
 0x229   :  { %v2035_v61 = vmax.f32 %v1507_v29, 0.0 }
 0x22a   :  { %v4984_v33 = vpack.c.bf16 %v2037_v43, %v2036_v30 }
 0x22b   :  { %v4986_v31 = vpack.c.bf16 %v2035_v61, %v2034_v62  ;;  %v3408_v23 = vpop.f32.mrb[168].mxu0 }
 0x22c   :  { %v1528_v54 = vadd.f32 %v4948_v14, %v3408_v23  ;;  %v1519_v48 = vpop.f32.mrb[169].mxu0 }
 0x22d   :  { %v1520_v44 = vadd.f32 %v4948_v14, %v1519_v48  ;;  %v3409_v58 = vpop.f32.mrb[170].mxu0 }
 0x22e   :  { %v1531_v47 = vadd.f32 %v4948_v14, %v3409_v58  ;;  %v1522_v37 = vpop.f32.mrb[171].mxu0  ;;  %v2040_v49 = vmax.f32 %v1528_v54, 0.0 }
 0x22f   :  { %v1523_v3 = vadd.f32 %v4948_v14, %v1522_v37  ;;  %v2038_v11 = vmax.f32 %v1520_v44, 0.0 }
 0x230   :  { %v2041_v4 = vmax.f32 %v1531_v47, 0.0 }
 0x231   :  { %v2039_v41 = vmax.f32 %v1523_v3, 0.0 }
 0x232   :  { %v4992_v13 = vpack.c.bf16 %v2041_v4, %v2040_v49 }
 0x233   :  { %v4994_v42 = vpack.c.bf16 %v2039_v41, %v2038_v11  ;;  %v3412_v20 = vpop.f32.mrb[172].mxu0 }
 0x234   :  { %v1544_v10 = vadd.f32 %v4948_v14, %v3412_v20  ;;  %v1535_v26 = vpop.f32.mrb[173].mxu0 }
 0x235   :  { %v1536_v27 = vadd.f32 %v4948_v14, %v1535_v26  ;;  %v3413_v39 = vpop.f32.mrb[174].mxu0 }
 0x236   :  { %v1547_v29 = vadd.f32 %v4948_v14, %v3413_v39  ;;  %v1538_v30 = vpop.f32.mrb[175].mxu0  ;;  %v2044_v62 = vmax.f32 %v1544_v10, 0.0 }
 0x237   :  { %v1539_v43 = vadd.f32 %v4948_v14, %v1538_v30  ;;  %v2042_v54 = vmax.f32 %v1536_v27, 0.0 }
 0x238   :  { %v2045_v61 = vmax.f32 %v1547_v29, 0.0  ;;  %v3090_v23 = vpop.f32.mrb[72].mxu1 }
 0x239   :  { %v2043_v48 = vmax.f32 %v1539_v43, 0.0  ;;  %v3091_v44 = vpop.f32.mrb[73].mxu1 }
 0x23a   :  { %v5000_v58 = vpack.c.bf16 %v2045_v61, %v2044_v62  ;;  %v3092_v47 = vadd.f32 %v3091_v44, %v3090_v23  ;;  %v3093_v37 = vpop.f32.mrb[74].mxu1 }
 0x23b   :  { %v2244_v3 = vpack.c.bf16 %v2043_v48, %v2042_v54  ;;  %v3416_v49 = vpop.f32.mrb[176].mxu0  ;;  %v3094_v4 = vpop.f32.mrb[75].mxu1 }
 0x23c   :  { %v1560_v11 = vadd.f32 %v4948_v14, %v3416_v49  ;;  %v1551_v41 = vpop.f32.mrb[177].mxu0  ;;  %v5004_v20 = vadd.f32 %v3092_v47, %v4952_v52 }
 0x23d   :  { %v1552_v10 = vadd.f32 %v4948_v14, %v1551_v41  ;;  %v3417_v26 = vpop.f32.mrb[178].mxu0 }
 0x23e   :  { %v1563_v27 = vadd.f32 %v4948_v14, %v3417_v26  ;;  %v1554_v39 = vpop.f32.mrb[179].mxu0  ;;  %v2048_v30 = vmax.f32 %v1560_v11, 0.0 }
 0x23f   :  { %v1555_v29 = vadd.f32 %v4948_v14, %v1554_v39  ;;  %v2046_v62 = vmax.f32 %v1552_v10, 0.0 }
 0x240   :  { %v2049_v43 = vmax.f32 %v1563_v27, 0.0 }
 0x241   :  { %v2047_v61 = vmax.f32 %v1555_v29, 0.0 }
 0x242   :  { %v2247_v23 = vpack.c.bf16 %v2049_v43, %v2048_v30 }
 0x243   :  { %v2246_v54 = vpack.c.bf16 %v2047_v61, %v2046_v62  ;;  %v3420_v48 = vpop.f32.mrb[180].mxu0 }
 0x244   :  { %v1576_v44 = vadd.f32 %v4948_v14, %v3420_v48  ;;  %v1567_v37 = vpop.f32.mrb[181].mxu0 }
 0x245   :  { %v1568_v52 = vadd.f32 %v4948_v14, %v1567_v37  ;;  %v3421_v47 = vpop.f32.mrb[182].mxu0  ;;  %3162 = vmatprep.subr.bf16.mxu1 %v2246_v54 }
 0x246   :  { %v1579_v49 = vadd.f32 %v4948_v14, %v3421_v47  ;;  %v1570_v4 = vpop.f32.mrb[183].mxu0  ;;  %3163 = vmatpush3.bf16.msra.mxu1 %v4978_v38  ;;  %v2052_v41 = vmax.f32 %v1576_v44, 0.0 }
 0x247   :  { %v1571_v11 = vadd.f32 %v4948_v14, %v1570_v4  ;;  %3164 = vmatprep.subr.bf16.mxu1 %v2247_v23  ;;  %v2050_v26 = vmax.f32 %v1568_v52, 0.0 }
 0x248   :  { %v2053_v10 = vmax.f32 %v1579_v49, 0.0 }
 0x249   :  { %v2051_v27 = vmax.f32 %v1571_v11, 0.0 }
 0x24a   :  { %v2249_v39 = vpack.c.bf16 %v2053_v10, %v2052_v41  ;;  %3165 = vmatpush3.bf16.msra.mxu1 %v4975_v12 }
 0x24b   :  { %v2248_v29 = vpack.c.bf16 %v2051_v27, %v2050_v26  ;;  %v3424_v30 = vpop.f32.mrb[184].mxu0 }
 0x24c   :  { %v1592_v43 = vadd.f32 %v4948_v14, %v3424_v30  ;;  %v1583_v62 = vpop.f32.mrb[185].mxu0 }
 0x24d   :  { %v1584_v61 = vadd.f32 %v4948_v14, %v1583_v62  ;;  %v3425_v54 = vpop.f32.mrb[186].mxu0  ;;  %3166 = vmatprep.subr.bf16.mxu1 %v2248_v29 }
 0x24e   :  { %v1595_v38 = vadd.f32 %v4948_v14, %v3425_v54  ;;  %v1586_v48 = vpop.f32.mrb[187].mxu0  ;;  %3167 = vmatpush3.bf16.msra.mxu1 %v4986_v31  ;;  %v2056_v44 = vmax.f32 %v1592_v43, 0.0  ;;  %v2692_v54 = vld [vmem:[%s5118_s6] sm:$0xff] }
 0x24f   :  { %v1587_v23 = vadd.f32 %v4948_v14, %v1586_v48  ;;  %3168 = vmatprep.subr.bf16.mxu1 %v2249_v39  ;;  %v2054_v12 = vmax.f32 %v1584_v61, 0.0  ;;  %v2136_v14 = vld [vmem:[%s5113_s1 + $0x50] sm:$0xff] }
 0x250   :  { %v2057_v37 = vmax.f32 %v1595_v38, 0.0  ;;  %v2152_v31 = vpack.c.bf16 %v2136_v14, %v2136_v14  ;;  %v2693_v38 = vld [vmem:[%s5118_s6 + $0x8] sm:$0xff]  ;;  %s3531_s6 = scalar_lea.vmem %s2783_s15, 128 }
 0x251   :  { %v2055_v52 = vmax.f32 %v1587_v23, 0.0  ;;  %v3519_v48 = vpack.c.bf16 %v2693_v38, %v2692_v54  ;;  %v2919_v23 = vld [vmem:[%s5117_s5] ss:$0 sm:$0xff]  ;;  %p3532_p0 = scmp.ne.s32.totalorder %s2783_s15, %s3531_s6  ;;  %p3537_p2 = scmp.lt.s32.totalorder %s3531_s6, %s3531_s6 }
 0x252   :  { %v2251_v47 = vpack.c.bf16 %v2057_v37, %v2056_v44  ;;  %3169 = vmatpush3.bf16.msra.mxu1 %v4984_v33  ;;  %v2139_v33 = vld [vmem:[%s5113_s1 + $0x68] sm:$0xff] }
 0x253   :  { %v2250_v49 = vpack.c.bf16 %v2055_v52, %v2054_v12  ;;  %p3538_p3 = por %p3537_p2, %p3536_p1 }
 0x255   :  { %3170 = vmatprep.subr.bf16.mxu1 %v2250_v49  ;;  %p3539_p4 = pnand %p3538_p3, %p3532_p0 }
 0x256   :  { %3171 = vmatpush3.bf16.msra.mxu1 %v4994_v42  ;;  %v2155_v42 = vpack.c.bf16 %v2139_v33, %v2139_v33 }
 0x257   :  { %3172 = vmatprep.subr.bf16.mxu1 %v2251_v47  ;;  %v2921_v47 = vld [vmem:[%s5119_s7] ss:$0 sm:$0xff] }
 0x25a   :  { %3173 = vmatpush3.bf16.msra.mxu1 %v4992_v13 }
 0x25b   :  { %3174 = vmatprep.subr.bf16.mxu1 %v4702_v63 }
 0x25e   :  { %3175 = vmatpush3.bf16.msra.mxu1 %v2244_v3 }
 0x25f   :  { %3176 = vmatprep.subr.bf16.mxu1 %v4699_v19 }
 0x262   :  { %3177 = vmatpush3.bf16.msra.mxu1 %v5000_v58 }
 0x263   :  { %3184 = vmatprep.subr.bf16.mxu1 %v4787_v55 }
 0x265   :  { %2519 = vmatmul.mubr.bf16.vlgmr.msra.gmra.mrb[88].mxu1 %v2152_v31 }
 0x266   :  { %3185 = vmatpush3.bf16.msra.mxu1 %v4722_v36  ;;  %2558 = vmatprep.mubr.bf16.mxu1 %v2155_v42 }
 0x267   :  { %3186 = vmatprep.subr.bf16.mxu1 %v4784_v28 }
 0x26a   :  { %3187 = vmatpush3.bf16.msra.mxu1 %v4719_v2 }
 0x26b   :  { %3188 = vmatprep.subr.bf16.mxu1 %v4800_v8 }
 0x26e   :  { %3189 = vmatpush3.bf16.msra.mxu1 %v4739_v59 }
 0x26f   :  { %3190 = vmatprep.subr.bf16.mxu1 %v4797_v5 }
 0x272   :  { %3191 = vmatpush3.bf16.msra.mxu1 %v4736_v18  ;;  %v2138_v18 = vld [vmem:[%s5113_s1 + $0x60] sm:$0xff] }
 0x273   :  { %3192 = vmatprep.subr.bf16.mxu1 %v4814_v57 }
 0x276   :  { %3193 = vmatpush3.bf16.msra.mxu1 %v4755_v16  ;;  %v2141_v16 = vld [vmem:[%s5113_s1 + $0x78] sm:$0xff] }
 0x277   :  { %3194 = vmatprep.subr.bf16.mxu1 %v4811_v46  ;;  %v2157_v55 = vpack.c.bf16 %v2141_v16, %v2141_v16 }
 0x278   :  { %v3112_v19 = vpop.f32.mrb[76].mxu1 }
 0x279   :  { %v3113_v63 = vpop.f32.mrb[77].mxu1 }
 0x27a   :  { %3195 = vmatpush3.bf16.msra.mxu1 %v4752_v25  ;;  %v3114_v36 = vadd.f32 %v3113_v63, %v3112_v19  ;;  %v3115_v2 = vpop.f32.mrb[78].mxu1  ;;  %v2154_v25 = vpack.c.bf16 %v2138_v18, %v2138_v18 }
 0x27b   :  { %3196 = vmatprep.subr.bf16.mxu1 %v4829_v34  ;;  %v3116_v28 = vpop.f32.mrb[79].mxu1 }
 0x27c   :  { %v2401_v59 = vadd.f32 %v3114_v36, %v5004_v20 }
 0x27e   :  { %3197 = vmatpush3.bf16.msra.mxu1 %v4771_v21 }
 0x27f   :  { %3198 = vmatprep.subr.bf16.mxu1 %v4825_v45 }
 0x282   :  { %3199 = vmatpush3.bf16.msra.mxu1 %v4768_v53  ;;  %v2140_v53 = vld [vmem:[%s5113_s1 + $0x70] sm:$0xff] }
 0x283   :  { %3206 = vmatprep.subr.bf16.mxu1 %v4912_v0  ;;  %v2156_v21 = vpack.c.bf16 %v2140_v53, %v2140_v53 }
 0x285   :  { %2559 = vmatmul.mubr.bf16.vlgmr.msra.gmra.mrb[92].mxu1 %v2154_v25 }
 0x286   :  { %3207 = vmatpush3.bf16.msra.mxu1 %v4843_v32  ;;  %2598 = vmatprep.mubr.bf16.mxu1 %v2157_v55  ;;  %v2607_v32 = vld [vmem:[%s5116_s4 + $0x8] sm:$0xff] }
 0x287   :  { %3208 = vmatprep.subr.bf16.mxu1 %v4908_v51 }
 0x28a   :  { %3209 = vmatpush3.bf16.msra.mxu1 %v4839_v56  ;;  %v2606_v56 = vld [vmem:[%s5116_s4] sm:$0xff] }
 0x28b   :  { %3210 = vmatprep.subr.bf16.mxu1 %v4923_v7 }
 0x28e   :  { %3211 = vmatpush3.bf16.msra.mxu1 %v4863_v60  ;;  %v3513_v60 = vpack.c.bf16 %v2607_v32, %v2606_v56 }
 0x28f   :  { %3212 = vmatprep.subr.bf16.mxu1 %v4920_v50 }
 0x292   :  { %3213 = vmatpush3.bf16.msra.mxu1 %v4860_v35  ;;  %v3555_v35 = vmov 0.0|0.0  }
 0x293   :  { %3214 = vmatprep.subr.bf16.mxu1 %v4938_v15  ;;  %v3557_v15 = vmov 0.0  }
 0x296   :  { %3215 = vmatpush3.bf16.msra.mxu1 %v4880_v22  ;;  %v2608_v22 = vld [vmem:[%s5116_s4 + $0x10] sm:$0xff] }
 0x297   :  { %3216 = vmatprep.subr.bf16.mxu1 %v4934_v17 }
 0x29a   :  { %3217 = vmatpush3.bf16.msra.mxu1 %v4876_v6 }
 0x29b   :  { %3218 = vmatprep.subr.bf16.mxu1 %v4958_v40 }
 0x29e   :  { %3219 = vmatpush3.bf16.msra.mxu1 %v4896_v9 }
 0x29f   :  { %3220 = vmatprep.subr.bf16.mxu1 %v4955_v24 }
 0x2a2   :  { %3221 = vmatpush3.bf16.msra.mxu1 %v4892_v1  ;;  %v2609_v1 = vld [vmem:[%s5116_s4 + $0x18] sm:$0xff] }
 0x2a3   :  { %3512 = vmatprep.subr.bf16.mxu1 %v3555_v35  ;;  %v3516_v51 = vpack.c.bf16 %v2609_v1, %v2608_v22 }
 0x2a5   :  { %2599 = vmatmul.mubr.bf16.vlgmr.msra.gmra.mrb[96].mxu1 %v2156_v21 }
 0x2a6   :  { %3514 = vmatpush3.bf16.msra.mxu1 %v3513_v60  ;;  %3502 = vmatprep.mubr.msk.f32.mxu1 %vm3556_vm2, %v3557_v15 }
 0x2a7   :  { %3515 = vmatprep.subr.bf16.mxu1 %v3555_v35 }
 0x2aa   :  { %3517 = vmatpush3.bf16.msra.mxu1 %v3516_v51 }
 0x2ab   :  { %3518 = vmatprep.subr.bf16.mxu1 %v3555_v35 }
 0x2b8   :  { %v3134_v5 = vpop.f32.mrb[80].mxu1 }
 0x2b9   :  { %v3135_v8 = vpop.f32.mrb[81].mxu1 }
 0x2ba   :  { %v3136_v46 = vadd.f32 %v3135_v8, %v3134_v5  ;;  %v3137_v57 = vpop.f32.mrb[82].mxu1 }
 0x2bb   :  { %v3138_v45 = vpop.f32.mrb[83].mxu1 }
 0x2bc   :  { %v2441_v34 = vadd.f32 %v3136_v46, %v2401_v59 }
 0x2f8   :  { %v3156_v6 = vpop.f32.mrb[84].mxu1 }
 0x2f9   :  { %v3157_v9 = vpop.f32.mrb[85].mxu1 }
 0x2fa   :  { %v3158_v0 = vadd.f32 %v3157_v9, %v3156_v6  ;;  %v3159_v50 = vpop.f32.mrb[86].mxu1 }
 0x2fb   :  { %v3160_v7 = vpop.f32.mrb[87].mxu1 }
 0x2fc   :  { %v2481_v17 = vadd.f32 %v3158_v0, %v2441_v34 }
 0x338   :  { %v3178_v24 = vpop.f32.mrb[88].mxu1 }
 0x339   :  { %v3179_v40 = vpop.f32.mrb[89].mxu1 }
 0x33a   :  { %v3180_v13 = vadd.f32 %v3179_v40, %v3178_v24  ;;  %v3181_v58 = vpop.f32.mrb[90].mxu1 }
 0x33b   :  { %v3182_v3 = vpop.f32.mrb[91].mxu1 }
 0x33c   :  { %v2521_v20 = vadd.f32 %v3180_v13, %v2481_v17 }
 0x358   :  { %v3200_v4 = vpop.f32.mrb[92].mxu1 }
 0x359   :  { %v3201_v11 = vpop.f32.mrb[93].mxu1 }
 0x35a   :  { %v3202_v41 = vadd.f32 %v3201_v11, %v3200_v4  ;;  %v3203_v10 = vpop.f32.mrb[94].mxu1 }
 0x35b   :  { %v3204_v26 = vpop.f32.mrb[95].mxu1 }
 0x35c   :  { %v2561_v27 = vadd.f32 %v3202_v41, %v2521_v20 }
 0x378   :  { %v3222_v39 = vpop.f32.mrb[96].mxu1 }
 0x379   :  { %v3223_v29 = vpop.f32.mrb[97].mxu1 }
 0x37a   :  { %v3224_v30 = vadd.f32 %v3223_v29, %v3222_v39  ;;  %v3225_v43 = vpop.f32.mrb[98].mxu1 }
 0x37b   :  { %v3226_v62 = vpop.f32.mrb[99].mxu1 }
 0x37c   :  { %v2601_v61 = vadd.f32 %v3224_v30, %v2561_v27 }
 0x37e   :  { %3503 = vmatmul.mubr.msk.f32.vlgmr.msra.gmra.mrb[100].mxu1 %vm2617_vm3, %v2601_v61 }
 0x37f   :  { %3509 = vmatprep.mubr.msk.f32.mxu1 %vm3556_vm2, %v3557_v15  ;;  %3520 = vmatpush3.bf16.msra.mxu1 %v3519_v48 }
 0x451   :  { %v2687_v44 = vpop.f32.mrb[100].mxu1 }
 0x452   :  { %v2688_v37 = vadd.f32 %v2919_v23, %v2687_v44  ;;  %v3504_v12 = vpop.f32.mrb[101].mxu1 }
 0x454   :  { %v2691_v52 = vmax.f32 %v2688_v37, 0.0 }
 0x456   :  { %3510 = vmatmul.mubr.msk.f32.vlgmr.msra.gmra.mrb[102].mxu1 %vm2701_vm4, %v2691_v52 }
 0x529   :  { %v2771_v49 = vpop.f32.mrb[102].mxu1 }
 0x52a   :  { %v2772_v14 = vadd.f32 %v2921_v47, %v2771_v49  ;;  %v3511_v33 = vpop.f32.mrb[103].mxu1 }
 0x52c   :  { %2775 = vst.msk [vmem:[#allocation2] sm:$0xff] %vm2701_vm4, %v2772_v14 }
 0x52d   :  { %3542 = shalt.err (!%p3539_p4)
}
 0x52e   :  { %s3543_s17 = scalar_lea.hbm %s5120_s8, 128 }
 0x52f   :  { %p3544_p5 = scmp.ne.s32.totalorder %s5120_s8, %s3543_s17  ;;  %p3547_p6 = scmp.lt.u32.totalorder %s3543_s17, %s5120_s8 }
 0x531   :  { %p3549_p7 = pnand %p3547_p6, %p3544_p5 }
 0x533   :  { %3552 = shalt.err (!%p3549_p7)
}
 0x534   :  { %2785 = dma.vmem_to_hbm [thread:$0]  %s2783_s15, 128, %s5120_s8, [#allocation3]  }
 0x535   :  { %3553 = dma.done.wait [#allocation3], 128  }
 0x536   :  { %3554 = vsyncadd [#allocation3], 4294967168 }
 0x537   :  { %2789 = vsyncpa [#allocation3], 1 }

</bundles_post_ra>
